<compile_context>
chip_gen: v7x
topology: tpu7x:2x2x1
jax: 0.10.0
libtpu: 0.0.40
codegen_flags: <defaults>
</compile_context>

<pallas_src>
import functools

import jax
import jax.numpy as jnp
from jax.experimental import pallas as pl
from jax.experimental.pallas import tpu as pltpu


# ----------------------------------------------------------------------------
# Synthetic (small) BERT config consistent with BertForSequenceClassification.
# ----------------------------------------------------------------------------
CONFIG = dict(
    vocab_size=100,
    hidden_size=32,
    num_hidden_layers=2,
    num_attention_heads=4,
    intermediate_size=64,
    max_position_embeddings=64,
    type_vocab_size=2,
    num_labels=2,
    layer_norm_eps=1e-12,
)


# ----------------------------------------------------------------------------
# In-kernel math helpers (pure VPU/EUP work).
# ----------------------------------------------------------------------------
def _layernorm(x, g, b, eps):
    mean = jnp.mean(x, axis=-1, keepdims=True)
    var = jnp.mean(jnp.square(x - mean), axis=-1, keepdims=True)
    return (x - mean) * jax.lax.rsqrt(var + eps) * g + b


def _erf(x):
    # Abramowitz & Stegun 7.1.26 polynomial, max abs error ~1.5e-7 — matches
    # the exact-erf GELU used by HuggingFace BERT to f32 working precision.
    a1, a2, a3, a4, a5 = (0.254829592, -0.284496736, 1.421413741,
                          -1.453152027, 1.061405429)
    p = 0.3275911
    ax = jnp.abs(x)
    t = 1.0 / (1.0 + p * ax)
    poly = ((((a5 * t + a4) * t + a3) * t + a2) * t + a1) * t
    y = 1.0 - poly * jnp.exp(-ax * ax)
    return jnp.where(x >= 0.0, y, -y)


def _gelu_exact(x):
    return 0.5 * x * (1.0 + _erf(x * 0.7071067811865475))


# ----------------------------------------------------------------------------
# Fused whole-model kernel: one grid step = (batch block i, layer l).
# The activation for batch block i lives in VMEM scratch across all l; only
# the per-sequence logits are written to HBM (at the last layer).
# ----------------------------------------------------------------------------
def _table_bert_kernel(x_ref, mask_ref, eg_ref, eb_ref,
                       qkvw_ref, qkvb_ref, ow_ref, ob_ref,
                       l1g_ref, l1b_ref, iw_ref, ib_ref, fw_ref, fb_ref,
                       l2g_ref, l2b_ref, pw_ref, pb_ref, cw_ref, cb_ref,
                       o_ref, h_sc,
                       *, bb, S, nH, Dh, eps):
    H = nH * Dh
    bf16 = jnp.bfloat16
    l = pl.program_id(1)

    # Layer 0: initialize the resident activation from the embedding sum and
    # apply the (fused) embedding LayerNorm.
    @pl.when(l == 0)
    def _():
        h_sc[...] = _layernorm(x_ref[...], eg_ref[...], eb_ref[...], eps)

    h = h_sc[...]                                        # (bb*S, H) f32

    # ---- fused QKV projection (bf16 operands, f32 accumulate) ----
    qkv = jnp.dot(h.astype(bf16), qkvw_ref[0],
                  preferred_element_type=jnp.float32) + qkvb_ref[0]   # (bb*S,3H)
    qkv_b = qkv.astype(bf16)                             # in-register, no scratch

    # ---- multi-head self-attention: bf16 matmuls, f32 softmax stats ----
    scale = Dh ** -0.5
    ctx_rows = []
    for bi in range(bb):                                 # per sequence in block
        r0 = bi * S
        maskb = mask_ref[bi]                             # (1, S) additive mask
        ctx_heads = []
        for hh in range(nH):
            # scale folded into q (O(S*Dh) mults instead of O(S^2))
            q_h = (qkv[r0:r0 + S, hh * Dh:(hh + 1) * Dh] * scale).astype(bf16)
            k_h = qkv_b[r0:r0 + S, H + hh * Dh:H + (hh + 1) * Dh]
            v_h = qkv_b[r0:r0 + S, 2 * H + hh * Dh:2 * H + (hh + 1) * Dh]
            s = jnp.einsum("qd,kd->qk", q_h, k_h,
                           preferred_element_type=jnp.float32) + maskb
            m = jnp.max(s, axis=-1, keepdims=True)
            p = jnp.exp(s - m)
            denom = jnp.sum(p, axis=-1, keepdims=True)
            ctx_h = jnp.einsum("qk,kd->qd", p.astype(bf16), v_h,
                               preferred_element_type=jnp.float32)
            # normalization deferred to after P@V (on (S, Dh), not (S, S))
            ctx_heads.append(ctx_h * pl.reciprocal(denom, approx=True))
        ctx_rows.append(jnp.concatenate(ctx_heads, axis=-1))
    ctx = jnp.concatenate(ctx_rows, axis=0).astype(bf16)  # (bb*S, H)

    # ---- attention output projection + residual + LayerNorm (fused) ----
    attn = jnp.dot(ctx, ow_ref[0],
                   preferred_element_type=jnp.float32) + ob_ref[0]
    h1 = _layernorm(attn + h, l1g_ref[0], l1b_ref[0], eps)

    # ---- FFN (exact-erf GELU) + residual + LayerNorm (fused) ----
    inter = jnp.dot(h1.astype(bf16), iw_ref[0],
                    preferred_element_type=jnp.float32) + ib_ref[0]
    inter = _gelu_exact(inter)
    ffn = jnp.dot(inter.astype(bf16), fw_ref[0],
                  preferred_element_type=jnp.float32) + fb_ref[0]
    h2 = _layernorm(ffn + h1, l2g_ref[0], l2b_ref[0], eps)
    h_sc[...] = h2

    # ---- last layer: fused pooler (tanh on CLS) + classifier head ----
    @pl.when(l == pl.num_programs(1) - 1)
    def _():
        cls = jnp.concatenate([h2[bi * S:bi * S + 1, :] for bi in range(bb)],
                              axis=0)                    # (bb, H) CLS rows
        pooled = jnp.tanh(
            jnp.dot(cls.astype(bf16), pw_ref[...],
                    preferred_element_type=jnp.float32) + pb_ref[...])
        logits = jnp.dot(pooled.astype(bf16), cw_ref[...],
                         preferred_element_type=jnp.float32) + cb_ref[...]
        for bi in range(bb):
            o_ref[bi] = logits[bi:bi + 1, :]             # (1, num_labels)


def run_table_bert(params, x_emb, add_mask, *, B, S, num_batch_blocks=None):
    cfg = CONFIG
    H = cfg["hidden_size"]
    I = cfg["intermediate_size"]
    L = cfg["num_hidden_layers"]
    nH = cfg["num_attention_heads"]
    Dh = H // nH
    NL = cfg["num_labels"]

    if num_batch_blocks is None:
        # One batch block per TensorCore on dual-TC parts (v7x).  On single-TC
        # v5e/v6e set num_batch_blocks=1 to collapse the batch axis into one
        # fat block and halve per-grid-step overhead.
        num_batch_blocks = min(B, 2)
    assert B % num_batch_blocks == 0
    bb = B // num_batch_blocks

    per_layer3 = lambda i, l: (l, 0, 0)
    const2 = lambda i, l: (0, 0)

    in_specs = [
        pl.BlockSpec((bb * S, H), lambda i, l: (i, 0)),       # x_emb
        pl.BlockSpec((bb, 1, S), lambda i, l: (i, 0, 0)),     # add_mask
        pl.BlockSpec((1, H), const2),                         # emb_ln_g
        pl.BlockSpec((1, H), const2),                         # emb_ln_b
        pl.BlockSpec((1, H, 3 * H), per_layer3),              # qkv_w
        pl.BlockSpec((1, 1, 3 * H), per_layer3),              # qkv_b
        pl.BlockSpec((1, H, H), per_layer3),                  # o_w
        pl.BlockSpec((1, 1, H), per_layer3),                  # o_b
        pl.BlockSpec((1, 1, H), per_layer3),                  # ln1_g
        pl.BlockSpec((1, 1, H), per_layer3),                  # ln1_b
        pl.BlockSpec((1, H, I), per_layer3),                  # i_w
        pl.BlockSpec((1, 1, I), per_layer3),                  # i_b
        pl.BlockSpec((1, I, H), per_layer3),                  # f_w
        pl.BlockSpec((1, 1, H), per_layer3),                  # f_b
        pl.BlockSpec((1, 1, H), per_layer3),                  # ln2_g
        pl.BlockSpec((1, 1, H), per_layer3),                  # ln2_b
        pl.BlockSpec((H, H), const2),                         # pool_w
        pl.BlockSpec((1, H), const2),                         # pool_b
        pl.BlockSpec((H, NL), const2),                        # cls_w
        pl.BlockSpec((1, NL), const2),                        # cls_b
    ]

    logits3 = pl.pallas_call(
        functools.partial(_table_bert_kernel, bb=bb, S=S, nH=nH, Dh=Dh,
                          eps=cfg["layer_norm_eps"]),
        grid=(num_batch_blocks, L),
        in_specs=in_specs,
        out_specs=pl.BlockSpec((bb, 1, NL), lambda i, l: (i, 0, 0)),
        out_shape=jax.ShapeDtypeStruct((B, 1, NL), jnp.float32),
        scratch_shapes=[pltpu.VMEM((bb * S, H), jnp.float32)],  # resident act
        compiler_params=pltpu.CompilerParams(
            dimension_semantics=("parallel", "arbitrary"),
            vmem_limit_bytes=32 * 1024 * 1024),
    )(x_emb, add_mask, params["emb_ln_g"], params["emb_ln_b"],
      params["qkv_w"], params["qkv_b"], params["o_w"], params["o_b"],
      params["ln1_g"], params["ln1_b"], params["i_w"], params["i_b"],
      params["f_w"], params["f_b"], params["ln2_g"], params["ln2_b"],
      params["pool_w"], params["pool_b"], params["cls_w"], params["cls_b"])
    return logits3.reshape(B, NL)


# ----------------------------------------------------------------------------
# Parameter construction (deterministic, synthetic), stacked per layer.
# ----------------------------------------------------------------------------
def init_params(key):
    cfg = CONFIG
    H, I, L = cfg["hidden_size"], cfg["intermediate_size"], cfg["num_hidden_layers"]

    def nrm(k, shape, scale=0.02):
        return scale * jax.random.normal(k, shape, dtype=jnp.float32)

    keys = iter(jax.random.split(key, 8 + 6 * L))

    params = dict(
        word_emb=nrm(next(keys), (cfg["vocab_size"], H)),
        pos_emb=nrm(next(keys), (cfg["max_position_embeddings"], H)),
        type_emb=nrm(next(keys), (cfg["type_vocab_size"], H)),
        emb_ln_g=jnp.ones((1, H), jnp.float32),
        emb_ln_b=jnp.zeros((1, H), jnp.float32),
        pool_w=nrm(next(keys), (H, H)).astype(jnp.bfloat16),
        pool_b=jnp.zeros((1, H), jnp.float32),
        cls_w=nrm(next(keys), (H, cfg["num_labels"])).astype(jnp.bfloat16),
        cls_b=jnp.zeros((1, cfg["num_labels"]), jnp.float32),
    )

    qkv_w, o_w, i_w, f_w = [], [], [], []
    for _ in range(L):
        qw = nrm(next(keys), (H, H))
        kw = nrm(next(keys), (H, H))
        vw = nrm(next(keys), (H, H))
        qkv_w.append(jnp.concatenate([qw, kw, vw], axis=1))   # (H, 3H)
        o_w.append(nrm(next(keys), (H, H)))
        i_w.append(nrm(next(keys), (H, I)))
        f_w.append(nrm(next(keys), (I, H)))

    params.update(
        qkv_w=jnp.stack(qkv_w).astype(jnp.bfloat16),          # (L, H, 3H)
        qkv_b=jnp.zeros((L, 1, 3 * H), jnp.float32),
        o_w=jnp.stack(o_w).astype(jnp.bfloat16),              # (L, H, H)
        o_b=jnp.zeros((L, 1, H), jnp.float32),
        ln1_g=jnp.ones((L, 1, H), jnp.float32),
        ln1_b=jnp.zeros((L, 1, H), jnp.float32),
        i_w=jnp.stack(i_w).astype(jnp.bfloat16),              # (L, H, I)
        i_b=jnp.zeros((L, 1, I), jnp.float32),
        f_w=jnp.stack(f_w).astype(jnp.bfloat16),              # (L, I, H)
        f_b=jnp.zeros((L, 1, H), jnp.float32),
        ln2_g=jnp.ones((L, 1, H), jnp.float32),
        ln2_b=jnp.zeros((L, 1, H), jnp.float32),
    )
    return params


# ----------------------------------------------------------------------------
# Forward pass: self._model(**inputs)[0]  ->  classification logits (B, labels)
# ----------------------------------------------------------------------------
def table_bert_forward(params, input_ids, token_type_ids, attention_mask):
    cfg = CONFIG
    B, S = input_ids.shape
    H = cfg["hidden_size"]

    # Embedding gathers are plain-JAX glue (no clean Pallas equivalent);
    # their LayerNorm is fused into layer 0 of the model kernel.
    we = params["word_emb"][input_ids]                       # (B, S, H)
    pe = params["pos_emb"][jnp.arange(S)][None, :, :]        # (1, S, H)
    te = params["type_emb"][token_type_ids]                  # (B, S, H)
    x_emb = (we + pe + te).reshape(B * S, H)

    # additive attention mask: 0 where attended, -1e9 where padded
    add_mask = ((1.0 - attention_mask.astype(jnp.float32)) * -1e9)[:, None, :]

    return run_table_bert(params, x_emb, add_mask, B=B, S=S)  # (B, labels)


# ----------------------------------------------------------------------------
if __name__ == "__main__":
    B, S = 2, 8
    key = jax.random.PRNGKey(0)
    k_param, k_ids, k_types = jax.random.split(key, 3)

    params = init_params(k_param)

    input_ids = jax.random.randint(k_ids, (B, S), 0, CONFIG["vocab_size"],
                                   dtype=jnp.int32)
    token_type_ids = jnp.concatenate(
        [jnp.zeros((B, S // 2), jnp.int32), jnp.ones((B, S // 2), jnp.int32)],
        axis=1)
    attention_mask = jnp.ones((B, S), jnp.float32).at[:, -2:].set(0.0)

    forward = jax.jit(table_bert_forward)
    logits = forward(params, input_ids, token_type_ids, attention_mask)
    jax.block_until_ready(logits)
    assert logits.shape == (B, CONFIG["num_labels"])
    print("KERNEL_OK")
</pallas_src>

<mosaic_0001>
module attributes {stable_mosaic.version = 11 : i64} {
  func.func @_table_bert_kernel(%arg0: i32, %arg1: i32, %arg2: memref<8x32xf32, #tpu.memory_space<vmem>>, %arg3: memref<1x1x8xf32, #tpu.memory_space<vmem>>, %arg4: memref<1x32xf32, #tpu.memory_space<vmem>>, %arg5: memref<1x32xf32, #tpu.memory_space<vmem>>, %arg6: memref<1x32x96xbf16, #tpu.memory_space<vmem>>, %arg7: memref<1x1x96xf32, #tpu.memory_space<vmem>>, %arg8: memref<1x32x32xbf16, #tpu.memory_space<vmem>>, %arg9: memref<1x1x32xf32, #tpu.memory_space<vmem>>, %arg10: memref<1x1x32xf32, #tpu.memory_space<vmem>>, %arg11: memref<1x1x32xf32, #tpu.memory_space<vmem>>, %arg12: memref<1x32x64xbf16, #tpu.memory_space<vmem>>, %arg13: memref<1x1x64xf32, #tpu.memory_space<vmem>>, %arg14: memref<1x64x32xbf16, #tpu.memory_space<vmem>>, %arg15: memref<1x1x32xf32, #tpu.memory_space<vmem>>, %arg16: memref<1x1x32xf32, #tpu.memory_space<vmem>>, %arg17: memref<1x1x32xf32, #tpu.memory_space<vmem>>, %arg18: memref<32x32xbf16, #tpu.memory_space<vmem>>, %arg19: memref<1x32xf32, #tpu.memory_space<vmem>>, %arg20: memref<32x2xbf16, #tpu.memory_space<vmem>>, %arg21: memref<1x2xf32, #tpu.memory_space<vmem>>, %arg22: memref<1x1x2xf32, #tpu.memory_space<vmem>>, %arg23: memref<8x32xf32, #tpu.memory_space<vmem>>) attributes {dimension_semantics = [#tpu.dimension_semantics<parallel>, #tpu.dimension_semantics<arbitrary>], iteration_bounds = array<i64: 2, 2>, scalar_prefetch = 0 : i64, scratch_operands = 1 : i64, tpu.core_type = #tpu.core_type<tc>, window_params = [{transform_indices = @transform_0, window_bounds = array<i64: 8, 32>}, {transform_indices = @transform_1, window_bounds = array<i64: 1, 1, 8>}, {pipeline_mode = #tpu.pipeline_mode<synchronous>, transform_indices = @transform_2, window_bounds = array<i64: 1, 32>}, {pipeline_mode = #tpu.pipeline_mode<synchronous>, transform_indices = @transform_3, window_bounds = array<i64: 1, 32>}, {transform_indices = @transform_4, window_bounds = array<i64: 1, 32, 96>}, {transform_indices = @transform_5, window_bounds = array<i64: 1, 1, 96>}, {transform_indices = @transform_6, window_bounds = array<i64: 1, 32, 32>}, {transform_indices = @transform_7, window_bounds = array<i64: 1, 1, 32>}, {transform_indices = @transform_8, window_bounds = array<i64: 1, 1, 32>}, {transform_indices = @transform_9, window_bounds = array<i64: 1, 1, 32>}, {transform_indices = @transform_10, window_bounds = array<i64: 1, 32, 64>}, {transform_indices = @transform_11, window_bounds = array<i64: 1, 1, 64>}, {transform_indices = @transform_12, window_bounds = array<i64: 1, 64, 32>}, {transform_indices = @transform_13, window_bounds = array<i64: 1, 1, 32>}, {transform_indices = @transform_14, window_bounds = array<i64: 1, 1, 32>}, {transform_indices = @transform_15, window_bounds = array<i64: 1, 1, 32>}, {pipeline_mode = #tpu.pipeline_mode<synchronous>, transform_indices = @transform_16, window_bounds = array<i64: 32, 32>}, {pipeline_mode = #tpu.pipeline_mode<synchronous>, transform_indices = @transform_17, window_bounds = array<i64: 1, 32>}, {pipeline_mode = #tpu.pipeline_mode<synchronous>, transform_indices = @transform_18, window_bounds = array<i64: 32, 2>}, {pipeline_mode = #tpu.pipeline_mode<synchronous>, transform_indices = @transform_19, window_bounds = array<i64: 1, 2>}, {transform_indices = @transform_20, window_bounds = array<i64: 1, 1, 2>}]} {
    %c0_i32 = arith.constant 0 : i32
    %0 = arith.cmpi eq, %arg1, %c0_i32 : i32
    %1 = arith.extui %0 : i1 to i32
    %c0_i32_0 = arith.constant 0 : i32
    %2 = arith.cmpi ne, %1, %c0_i32_0 : i32
    scf.if %2 {
      %c0_92 = arith.constant 0 : index
      %c0_93 = arith.constant 0 : index
      %222 = vector.load %arg2[%c0_92, %c0_93] : memref<8x32xf32, #tpu.memory_space<vmem>>, vector<8x32xf32>
      %c0_94 = arith.constant 0 : index
      %c0_95 = arith.constant 0 : index
      %223 = vector.load %arg4[%c0_94, %c0_95] : memref<1x32xf32, #tpu.memory_space<vmem>>, vector<1x32xf32>
      %c0_96 = arith.constant 0 : index
      %c0_97 = arith.constant 0 : index
      %224 = vector.load %arg5[%c0_96, %c0_97] : memref<1x32xf32, #tpu.memory_space<vmem>>, vector<1x32xf32>
      %cst_98 = arith.constant dense<0.000000e+00> : vector<8xf32>
      %225 = vector.multi_reduction <add>, %222, %cst_98 [1] : vector<8x32xf32> to vector<8xf32>
      %226 = vector.shape_cast %225 : vector<8xf32> to vector<8x1xf32>
      %cst_99 = arith.constant 3.200000e+01 : f32
      %227 = vector.broadcast %cst_99 : f32 to vector<8x1xf32>
      %228 = arith.divf %226, %227 : vector<8x1xf32>
      %229 = vector.broadcast %228 : vector<8x1xf32> to vector<8x32xf32>
      %230 = arith.subf %222, %229 : vector<8x32xf32>
      %231 = arith.mulf %230, %230 : vector<8x32xf32>
      %cst_100 = arith.constant dense<0.000000e+00> : vector<8xf32>
      %232 = vector.multi_reduction <add>, %231, %cst_100 [1] : vector<8x32xf32> to vector<8xf32>
      %233 = vector.shape_cast %232 : vector<8xf32> to vector<8x1xf32>
      %cst_101 = arith.constant 3.200000e+01 : f32
      %234 = vector.broadcast %cst_101 : f32 to vector<8x1xf32>
      %235 = arith.divf %233, %234 : vector<8x1xf32>
      %236 = vector.broadcast %228 : vector<8x1xf32> to vector<8x32xf32>
      %237 = arith.subf %222, %236 : vector<8x32xf32>
      %cst_102 = arith.constant 9.99999996E-13 : f32
      %238 = vector.broadcast %cst_102 : f32 to vector<8x1xf32>
      %239 = arith.addf %235, %238 : vector<8x1xf32>
      %240 = math.rsqrt %239 : vector<8x1xf32>
      %241 = vector.broadcast %240 : vector<8x1xf32> to vector<8x32xf32>
      %242 = arith.mulf %237, %241 : vector<8x32xf32>
      %243 = vector.broadcast %223 : vector<1x32xf32> to vector<8x32xf32>
      %244 = arith.mulf %242, %243 : vector<8x32xf32>
      %245 = vector.broadcast %224 : vector<1x32xf32> to vector<8x32xf32>
      %246 = arith.addf %244, %245 : vector<8x32xf32>
      %c0_103 = arith.constant 0 : index
      %c0_104 = arith.constant 0 : index
      %247 = vector.load %arg23[%c0_103, %c0_104] : memref<8x32xf32, #tpu.memory_space<vmem>>, vector<8x32xf32>
      tpu.vector_store %arg23[%c0_103, %c0_104], %246 {strides = array<i32>} : memref<8x32xf32, #tpu.memory_space<vmem>>, vector<8x32xf32>,
    } else {
    }
    %c0 = arith.constant 0 : index
    %c0_1 = arith.constant 0 : index
    %3 = vector.load %arg23[%c0, %c0_1] : memref<8x32xf32, #tpu.memory_space<vmem>>, vector<8x32xf32>
    %4 = arith.truncf %3 : vector<8x32xf32> to vector<8x32xbf16>
    %c0_2 = arith.constant 0 : index
    %c0_3 = arith.constant 0 : index
    %c0_4 = arith.constant 0 : index
    %5 = vector.load %arg6[%c0_2, %c0_3, %c0_4] : memref<1x32x96xbf16, #tpu.memory_space<vmem>>, vector<1x32x96xbf16>
    %6 = vector.shape_cast %5 : vector<1x32x96xbf16> to vector<32x96xbf16>
    %cst = arith.constant dense<0.000000e+00> : vector<8x96xf32>
    %7 = tpu.matmul %4, %6, %cst {dimension_numbers = #tpu.dot_dimension_numbers<[1], [0], [0], [1], [0, 0, 1, 1], [], []>} : vector<8x32xbf16>, vector<32x96xbf16>, vector<8x96xf32> -> vector<8x96xf32>
    %c0_5 = arith.constant 0 : index
    %c0_6 = arith.constant 0 : index
    %c0_7 = arith.constant 0 : index
    %8 = vector.load %arg7[%c0_5, %c0_6, %c0_7] : memref<1x1x96xf32, #tpu.memory_space<vmem>>, vector<1x1x96xf32>
    %9 = vector.shape_cast %8 : vector<1x1x96xf32> to vector<1x96xf32>
    %10 = vector.broadcast %9 : vector<1x96xf32> to vector<8x96xf32>
    %11 = arith.addf %7, %10 : vector<8x96xf32>
    %12 = arith.truncf %11 : vector<8x96xf32> to vector<8x96xbf16>
    %c0_8 = arith.constant 0 : index
    %c0_9 = arith.constant 0 : index
    %c0_10 = arith.constant 0 : index
    %13 = vector.load %arg3[%c0_8, %c0_9, %c0_10] : memref<1x1x8xf32, #tpu.memory_space<vmem>>, vector<1x1x8xf32>
    %14 = vector.shape_cast %13 : vector<1x1x8xf32> to vector<1x8xf32>
    %15 = vector.extract_strided_slice %11 {offsets = [0, 0], sizes = [8, 8], strides = [1, 1]} : vector<8x96xf32> to vector<8x8xf32>
    %cst_11 = arith.constant 0.353553385 : f32
    %16 = vector.broadcast %cst_11 : f32 to vector<8x8xf32>
    %17 = arith.mulf %15, %16 : vector<8x8xf32>
    %18 = arith.truncf %17 : vector<8x8xf32> to vector<8x8xbf16>
    %19 = vector.extract_strided_slice %12 {offsets = [0, 32], sizes = [8, 8], strides = [1, 1]} : vector<8x96xbf16> to vector<8x8xbf16>
    %20 = vector.extract_strided_slice %12 {offsets = [0, 64], sizes = [8, 8], strides = [1, 1]} : vector<8x96xbf16> to vector<8x8xbf16>
    "tpu.trace_start"() <{level = 10 : i32, message = "qd,kd->qk"}> : () -> ()
    %cst_12 = arith.constant dense<0.000000e+00> : vector<8x8xf32>
    %21 = tpu.matmul %18, %19, %cst_12 {dimension_numbers = #tpu.dot_dimension_numbers<[1], [1], [0], [0], [0, 0, 1, 0], [], []>} : vector<8x8xbf16>, vector<8x8xbf16>, vector<8x8xf32> -> vector<8x8xf32>
    "tpu.trace_stop"() : () -> ()
    %22 = vector.broadcast %14 : vector<1x8xf32> to vector<8x8xf32>
    %23 = arith.addf %21, %22 : vector<8x8xf32>
    %cst_13 = arith.constant dense<0xFF800000> : vector<8xf32>
    %24 = vector.multi_reduction <maximumf>, %23, %cst_13 [1] : vector<8x8xf32> to vector<8xf32>
    %25 = vector.shape_cast %24 : vector<8xf32> to vector<8x1xf32>
    %26 = vector.broadcast %25 : vector<8x1xf32> to vector<8x8xf32>
    %27 = arith.subf %23, %26 : vector<8x8xf32>
    %28 = math.exp %27 : vector<8x8xf32>
    %cst_14 = arith.constant dense<0.000000e+00> : vector<8xf32>
    %29 = vector.multi_reduction <add>, %28, %cst_14 [1] : vector<8x8xf32> to vector<8xf32>
    %30 = vector.shape_cast %29 : vector<8xf32> to vector<8x1xf32>
    %31 = arith.truncf %28 : vector<8x8xf32> to vector<8x8xbf16>
    "tpu.trace_start"() <{level = 10 : i32, message = "qk,kd->qd"}> : () -> ()
    %cst_15 = arith.constant dense<0.000000e+00> : vector<8x8xf32>
    %32 = tpu.matmul %31, %20, %cst_15 {dimension_numbers = #tpu.dot_dimension_numbers<[1], [0], [0], [1], [0, 0, 1, 1], [], []>} : vector<8x8xbf16>, vector<8x8xbf16>, vector<8x8xf32> -> vector<8x8xf32>
    "tpu.trace_stop"() : () -> ()
    %33 = tpu.reciprocal %30 {approx = true} : vector<8x1xf32> -> vector<8x1xf32>
    %34 = vector.broadcast %33 : vector<8x1xf32> to vector<8x8xf32>
    %35 = arith.mulf %32, %34 : vector<8x8xf32>
    %36 = vector.extract_strided_slice %11 {offsets = [0, 8], sizes = [8, 8], strides = [1, 1]} : vector<8x96xf32> to vector<8x8xf32>
    %cst_16 = arith.constant 0.353553385 : f32
    %37 = vector.broadcast %cst_16 : f32 to vector<8x8xf32>
    %38 = arith.mulf %36, %37 : vector<8x8xf32>
    %39 = arith.truncf %38 : vector<8x8xf32> to vector<8x8xbf16>
    %40 = vector.extract_strided_slice %12 {offsets = [0, 40], sizes = [8, 8], strides = [1, 1]} : vector<8x96xbf16> to vector<8x8xbf16>
    %41 = vector.extract_strided_slice %12 {offsets = [0, 72], sizes = [8, 8], strides = [1, 1]} : vector<8x96xbf16> to vector<8x8xbf16>
    "tpu.trace_start"() <{level = 10 : i32, message = "qd,kd->qk"}> : () -> ()
    %cst_17 = arith.constant dense<0.000000e+00> : vector<8x8xf32>
    %42 = tpu.matmul %39, %40, %cst_17 {dimension_numbers = #tpu.dot_dimension_numbers<[1], [1], [0], [0], [0, 0, 1, 0], [], []>} : vector<8x8xbf16>, vector<8x8xbf16>, vector<8x8xf32> -> vector<8x8xf32>
    "tpu.trace_stop"() : () -> ()
    %43 = vector.broadcast %14 : vector<1x8xf32> to vector<8x8xf32>
    %44 = arith.addf %42, %43 : vector<8x8xf32>
    %cst_18 = arith.constant dense<0xFF800000> : vector<8xf32>
    %45 = vector.multi_reduction <maximumf>, %44, %cst_18 [1] : vector<8x8xf32> to vector<8xf32>
    %46 = vector.shape_cast %45 : vector<8xf32> to vector<8x1xf32>
    %47 = vector.broadcast %46 : vector<8x1xf32> to vector<8x8xf32>
    %48 = arith.subf %44, %47 : vector<8x8xf32>
    %49 = math.exp %48 : vector<8x8xf32>
    %cst_19 = arith.constant dense<0.000000e+00> : vector<8xf32>
    %50 = vector.multi_reduction <add>, %49, %cst_19 [1] : vector<8x8xf32> to vector<8xf32>
    %51 = vector.shape_cast %50 : vector<8xf32> to vector<8x1xf32>
    %52 = arith.truncf %49 : vector<8x8xf32> to vector<8x8xbf16>
    "tpu.trace_start"() <{level = 10 : i32, message = "qk,kd->qd"}> : () -> ()
    %cst_20 = arith.constant dense<0.000000e+00> : vector<8x8xf32>
    %53 = tpu.matmul %52, %41, %cst_20 {dimension_numbers = #tpu.dot_dimension_numbers<[1], [0], [0], [1], [0, 0, 1, 1], [], []>} : vector<8x8xbf16>, vector<8x8xbf16>, vector<8x8xf32> -> vector<8x8xf32>
    "tpu.trace_stop"() : () -> ()
    %54 = tpu.reciprocal %51 {approx = true} : vector<8x1xf32> -> vector<8x1xf32>
    %55 = vector.broadcast %54 : vector<8x1xf32> to vector<8x8xf32>
    %56 = arith.mulf %53, %55 : vector<8x8xf32>
    %57 = vector.extract_strided_slice %11 {offsets = [0, 16], sizes = [8, 8], strides = [1, 1]} : vector<8x96xf32> to vector<8x8xf32>
    %cst_21 = arith.constant 0.353553385 : f32
    %58 = vector.broadcast %cst_21 : f32 to vector<8x8xf32>
    %59 = arith.mulf %57, %58 : vector<8x8xf32>
    %60 = arith.truncf %59 : vector<8x8xf32> to vector<8x8xbf16>
    %61 = vector.extract_strided_slice %12 {offsets = [0, 48], sizes = [8, 8], strides = [1, 1]} : vector<8x96xbf16> to vector<8x8xbf16>
    %62 = vector.extract_strided_slice %12 {offsets = [0, 80], sizes = [8, 8], strides = [1, 1]} : vector<8x96xbf16> to vector<8x8xbf16>
    "tpu.trace_start"() <{level = 10 : i32, message = "qd,kd->qk"}> : () -> ()
    %cst_22 = arith.constant dense<0.000000e+00> : vector<8x8xf32>
    %63 = tpu.matmul %60, %61, %cst_22 {dimension_numbers = #tpu.dot_dimension_numbers<[1], [1], [0], [0], [0, 0, 1, 0], [], []>} : vector<8x8xbf16>, vector<8x8xbf16>, vector<8x8xf32> -> vector<8x8xf32>
    "tpu.trace_stop"() : () -> ()
    %64 = vector.broadcast %14 : vector<1x8xf32> to vector<8x8xf32>
    %65 = arith.addf %63, %64 : vector<8x8xf32>
    %cst_23 = arith.constant dense<0xFF800000> : vector<8xf32>
    %66 = vector.multi_reduction <maximumf>, %65, %cst_23 [1] : vector<8x8xf32> to vector<8xf32>
    %67 = vector.shape_cast %66 : vector<8xf32> to vector<8x1xf32>
    %68 = vector.broadcast %67 : vector<8x1xf32> to vector<8x8xf32>
    %69 = arith.subf %65, %68 : vector<8x8xf32>
    %70 = math.exp %69 : vector<8x8xf32>
    %cst_24 = arith.constant dense<0.000000e+00> : vector<8xf32>
    %71 = vector.multi_reduction <add>, %70, %cst_24 [1] : vector<8x8xf32> to vector<8xf32>
    %72 = vector.shape_cast %71 : vector<8xf32> to vector<8x1xf32>
    %73 = arith.truncf %70 : vector<8x8xf32> to vector<8x8xbf16>
    "tpu.trace_start"() <{level = 10 : i32, message = "qk,kd->qd"}> : () -> ()
    %cst_25 = arith.constant dense<0.000000e+00> : vector<8x8xf32>
    %74 = tpu.matmul %73, %62, %cst_25 {dimension_numbers = #tpu.dot_dimension_numbers<[1], [0], [0], [1], [0, 0, 1, 1], [], []>} : vector<8x8xbf16>, vector<8x8xbf16>, vector<8x8xf32> -> vector<8x8xf32>
    "tpu.trace_stop"() : () -> ()
    %75 = tpu.reciprocal %72 {approx = true} : vector<8x1xf32> -> vector<8x1xf32>
    %76 = vector.broadcast %75 : vector<8x1xf32> to vector<8x8xf32>
    %77 = arith.mulf %74, %76 : vector<8x8xf32>
    %78 = vector.extract_strided_slice %11 {offsets = [0, 24], sizes = [8, 8], strides = [1, 1]} : vector<8x96xf32> to vector<8x8xf32>
    %cst_26 = arith.constant 0.353553385 : f32
    %79 = vector.broadcast %cst_26 : f32 to vector<8x8xf32>
    %80 = arith.mulf %78, %79 : vector<8x8xf32>
    %81 = arith.truncf %80 : vector<8x8xf32> to vector<8x8xbf16>
    %82 = vector.extract_strided_slice %12 {offsets = [0, 56], sizes = [8, 8], strides = [1, 1]} : vector<8x96xbf16> to vector<8x8xbf16>
    %83 = vector.extract_strided_slice %12 {offsets = [0, 88], sizes = [8, 8], strides = [1, 1]} : vector<8x96xbf16> to vector<8x8xbf16>
    "tpu.trace_start"() <{level = 10 : i32, message = "qd,kd->qk"}> : () -> ()
    %cst_27 = arith.constant dense<0.000000e+00> : vector<8x8xf32>
    %84 = tpu.matmul %81, %82, %cst_27 {dimension_numbers = #tpu.dot_dimension_numbers<[1], [1], [0], [0], [0, 0, 1, 0], [], []>} : vector<8x8xbf16>, vector<8x8xbf16>, vector<8x8xf32> -> vector<8x8xf32>
    "tpu.trace_stop"() : () -> ()
    %85 = vector.broadcast %14 : vector<1x8xf32> to vector<8x8xf32>
    %86 = arith.addf %84, %85 : vector<8x8xf32>
    %cst_28 = arith.constant dense<0xFF800000> : vector<8xf32>
    %87 = vector.multi_reduction <maximumf>, %86, %cst_28 [1] : vector<8x8xf32> to vector<8xf32>
    %88 = vector.shape_cast %87 : vector<8xf32> to vector<8x1xf32>
    %89 = vector.broadcast %88 : vector<8x1xf32> to vector<8x8xf32>
    %90 = arith.subf %86, %89 : vector<8x8xf32>
    %91 = math.exp %90 : vector<8x8xf32>
    %cst_29 = arith.constant dense<0.000000e+00> : vector<8xf32>
    %92 = vector.multi_reduction <add>, %91, %cst_29 [1] : vector<8x8xf32> to vector<8xf32>
    %93 = vector.shape_cast %92 : vector<8xf32> to vector<8x1xf32>
    %94 = arith.truncf %91 : vector<8x8xf32> to vector<8x8xbf16>
    "tpu.trace_start"() <{level = 10 : i32, message = "qk,kd->qd"}> : () -> ()
    %cst_30 = arith.constant dense<0.000000e+00> : vector<8x8xf32>
    %95 = tpu.matmul %94, %83, %cst_30 {dimension_numbers = #tpu.dot_dimension_numbers<[1], [0], [0], [1], [0, 0, 1, 1], [], []>} : vector<8x8xbf16>, vector<8x8xbf16>, vector<8x8xf32> -> vector<8x8xf32>
    "tpu.trace_stop"() : () -> ()
    %96 = tpu.reciprocal %93 {approx = true} : vector<8x1xf32> -> vector<8x1xf32>
    %97 = vector.broadcast %96 : vector<8x1xf32> to vector<8x8xf32>
    %98 = arith.mulf %95, %97 : vector<8x8xf32>
    %99 = tpu.concatenate %35, %56, %77, %98 in 1 : vector<8x8xf32>, vector<8x8xf32>, vector<8x8xf32>, vector<8x8xf32> -> vector<8x32xf32>
    %100 = arith.truncf %99 : vector<8x32xf32> to vector<8x32xbf16>
    %c0_31 = arith.constant 0 : index
    %c0_32 = arith.constant 0 : index
    %c0_33 = arith.constant 0 : index
    %101 = vector.load %arg8[%c0_31, %c0_32, %c0_33] : memref<1x32x32xbf16, #tpu.memory_space<vmem>>, vector<1x32x32xbf16>
    %102 = vector.shape_cast %101 : vector<1x32x32xbf16> to vector<32x32xbf16>
    %cst_34 = arith.constant dense<0.000000e+00> : vector<8x32xf32>
    %103 = tpu.matmul %100, %102, %cst_34 {dimension_numbers = #tpu.dot_dimension_numbers<[1], [0], [0], [1], [0, 0, 1, 1], [], []>} : vector<8x32xbf16>, vector<32x32xbf16>, vector<8x32xf32> -> vector<8x32xf32>
    %c0_35 = arith.constant 0 : index
    %c0_36 = arith.constant 0 : index
    %c0_37 = arith.constant 0 : index
    %104 = vector.load %arg9[%c0_35, %c0_36, %c0_37] : memref<1x1x32xf32, #tpu.memory_space<vmem>>, vector<1x1x32xf32>
    %105 = vector.shape_cast %104 : vector<1x1x32xf32> to vector<1x32xf32>
    %106 = vector.broadcast %105 : vector<1x32xf32> to vector<8x32xf32>
    %107 = arith.addf %103, %106 : vector<8x32xf32>
    %108 = arith.addf %107, %3 : vector<8x32xf32>
    %c0_38 = arith.constant 0 : index
    %c0_39 = arith.constant 0 : index
    %c0_40 = arith.constant 0 : index
    %109 = vector.load %arg10[%c0_38, %c0_39, %c0_40] : memref<1x1x32xf32, #tpu.memory_space<vmem>>, vector<1x1x32xf32>
    %110 = vector.shape_cast %109 : vector<1x1x32xf32> to vector<1x32xf32>
    %c0_41 = arith.constant 0 : index
    %c0_42 = arith.constant 0 : index
    %c0_43 = arith.constant 0 : index
    %111 = vector.load %arg11[%c0_41, %c0_42, %c0_43] : memref<1x1x32xf32, #tpu.memory_space<vmem>>, vector<1x1x32xf32>
    %112 = vector.shape_cast %111 : vector<1x1x32xf32> to vector<1x32xf32>
    %cst_44 = arith.constant dense<0.000000e+00> : vector<8xf32>
    %113 = vector.multi_reduction <add>, %108, %cst_44 [1] : vector<8x32xf32> to vector<8xf32>
    %114 = vector.shape_cast %113 : vector<8xf32> to vector<8x1xf32>
    %cst_45 = arith.constant 3.200000e+01 : f32
    %115 = vector.broadcast %cst_45 : f32 to vector<8x1xf32>
    %116 = arith.divf %114, %115 : vector<8x1xf32>
    %117 = vector.broadcast %116 : vector<8x1xf32> to vector<8x32xf32>
    %118 = arith.subf %108, %117 : vector<8x32xf32>
    %119 = arith.mulf %118, %118 : vector<8x32xf32>
    %cst_46 = arith.constant dense<0.000000e+00> : vector<8xf32>
    %120 = vector.multi_reduction <add>, %119, %cst_46 [1] : vector<8x32xf32> to vector<8xf32>
    %121 = vector.shape_cast %120 : vector<8xf32> to vector<8x1xf32>
    %cst_47 = arith.constant 3.200000e+01 : f32
    %122 = vector.broadcast %cst_47 : f32 to vector<8x1xf32>
    %123 = arith.divf %121, %122 : vector<8x1xf32>
    %124 = vector.broadcast %116 : vector<8x1xf32> to vector<8x32xf32>
    %125 = arith.subf %108, %124 : vector<8x32xf32>
    %cst_48 = arith.constant 9.99999996E-13 : f32
    %126 = vector.broadcast %cst_48 : f32 to vector<8x1xf32>
    %127 = arith.addf %123, %126 : vector<8x1xf32>
    %128 = math.rsqrt %127 : vector<8x1xf32>
    %129 = vector.broadcast %128 : vector<8x1xf32> to vector<8x32xf32>
    %130 = arith.mulf %125, %129 : vector<8x32xf32>
    %131 = vector.broadcast %110 : vector<1x32xf32> to vector<8x32xf32>
    %132 = arith.mulf %130, %131 : vector<8x32xf32>
    %133 = vector.broadcast %112 : vector<1x32xf32> to vector<8x32xf32>
    %134 = arith.addf %132, %133 : vector<8x32xf32>
    %135 = arith.truncf %134 : vector<8x32xf32> to vector<8x32xbf16>
    %c0_49 = arith.constant 0 : index
    %c0_50 = arith.constant 0 : index
    %c0_51 = arith.constant 0 : index
    %136 = vector.load %arg12[%c0_49, %c0_50, %c0_51] : memref<1x32x64xbf16, #tpu.memory_space<vmem>>, vector<1x32x64xbf16>
    %137 = vector.shape_cast %136 : vector<1x32x64xbf16> to vector<32x64xbf16>
    %cst_52 = arith.constant dense<0.000000e+00> : vector<8x64xf32>
    %138 = tpu.matmul %135, %137, %cst_52 {dimension_numbers = #tpu.dot_dimension_numbers<[1], [0], [0], [1], [0, 0, 1, 1], [], []>} : vector<8x32xbf16>, vector<32x64xbf16>, vector<8x64xf32> -> vector<8x64xf32>
    %c0_53 = arith.constant 0 : index
    %c0_54 = arith.constant 0 : index
    %c0_55 = arith.constant 0 : index
    %139 = vector.load %arg13[%c0_53, %c0_54, %c0_55] : memref<1x1x64xf32, #tpu.memory_space<vmem>>, vector<1x1x64xf32>
    %140 = vector.shape_cast %139 : vector<1x1x64xf32> to vector<1x64xf32>
    %141 = vector.broadcast %140 : vector<1x64xf32> to vector<8x64xf32>
    %142 = arith.addf %138, %141 : vector<8x64xf32>
    %cst_56 = arith.constant 5.000000e-01 : f32
    %143 = vector.broadcast %cst_56 : f32 to vector<8x64xf32>
    %144 = arith.mulf %143, %142 : vector<8x64xf32>
    %cst_57 = arith.constant 0.707106769 : f32
    %145 = vector.broadcast %cst_57 : f32 to vector<8x64xf32>
    %146 = arith.mulf %142, %145 : vector<8x64xf32>
    %147 = math.absf %146 : vector<8x64xf32>
    %cst_58 = arith.constant 0.327591091 : f32
    %148 = vector.broadcast %cst_58 : f32 to vector<8x64xf32>
    %149 = arith.mulf %148, %147 : vector<8x64xf32>
    %cst_59 = arith.constant 1.000000e+00 : f32
    %150 = vector.broadcast %cst_59 : f32 to vector<8x64xf32>
    %151 = arith.addf %150, %149 : vector<8x64xf32>
    %cst_60 = arith.constant 1.000000e+00 : f32
    %152 = vector.broadcast %cst_60 : f32 to vector<8x64xf32>
    %153 = arith.divf %152, %151 : vector<8x64xf32>
    %cst_61 = arith.constant 1.06140542 : f32
    %154 = vector.broadcast %cst_61 : f32 to vector<8x64xf32>
    %155 = arith.mulf %154, %153 : vector<8x64xf32>
    %cst_62 = arith.constant -1.45315206 : f32
    %156 = vector.broadcast %cst_62 : f32 to vector<8x64xf32>
    %157 = arith.addf %155, %156 : vector<8x64xf32>
    %158 = arith.mulf %157, %153 : vector<8x64xf32>
    %cst_63 = arith.constant 1.42141378 : f32
    %159 = vector.broadcast %cst_63 : f32 to vector<8x64xf32>
    %160 = arith.addf %158, %159 : vector<8x64xf32>
    %161 = arith.mulf %160, %153 : vector<8x64xf32>
    %cst_64 = arith.constant -0.284496725 : f32
    %162 = vector.broadcast %cst_64 : f32 to vector<8x64xf32>
    %163 = arith.addf %161, %162 : vector<8x64xf32>
    %164 = arith.mulf %163, %153 : vector<8x64xf32>
    %cst_65 = arith.constant 0.254829586 : f32
    %165 = vector.broadcast %cst_65 : f32 to vector<8x64xf32>
    %166 = arith.addf %164, %165 : vector<8x64xf32>
    %167 = arith.mulf %166, %153 : vector<8x64xf32>
    %cst_66 = arith.constant 0.000000e+00 : f32
    %168 = vector.broadcast %cst_66 : f32 to vector<8x64xf32>
    %169 = arith.subf %168, %147 : vector<8x64xf32>
    %170 = arith.mulf %169, %147 : vector<8x64xf32>
    %171 = math.exp %170 : vector<8x64xf32>
    %172 = arith.mulf %167, %171 : vector<8x64xf32>
    %cst_67 = arith.constant 1.000000e+00 : f32
    %173 = vector.broadcast %cst_67 : f32 to vector<8x64xf32>
    %174 = arith.subf %173, %172 : vector<8x64xf32>
    %cst_68 = arith.constant 0.000000e+00 : f32
    %175 = vector.broadcast %cst_68 : f32 to vector<8x64xf32>
    %176 = arith.cmpf oge, %146, %175 : vector<8x64xf32>
    %cst_69 = arith.constant 0.000000e+00 : f32
    %177 = vector.broadcast %cst_69 : f32 to vector<8x64xf32>
    %178 = arith.subf %177, %174 : vector<8x64xf32>
    %179 = arith.select %176, %174, %178 : vector<8x64xi1>, vector<8x64xf32>
    %cst_70 = arith.constant 1.000000e+00 : f32
    %180 = vector.broadcast %cst_70 : f32 to vector<8x64xf32>
    %181 = arith.addf %180, %179 : vector<8x64xf32>
    %182 = arith.mulf %144, %181 : vector<8x64xf32>
    %183 = arith.truncf %182 : vector<8x64xf32> to vector<8x64xbf16>
    %c0_71 = arith.constant 0 : index
    %c0_72 = arith.constant 0 : index
    %c0_73 = arith.constant 0 : index
    %184 = vector.load %arg14[%c0_71, %c0_72, %c0_73] : memref<1x64x32xbf16, #tpu.memory_space<vmem>>, vector<1x64x32xbf16>
    %185 = vector.shape_cast %184 : vector<1x64x32xbf16> to vector<64x32xbf16>
    %cst_74 = arith.constant dense<0.000000e+00> : vector<8x32xf32>
    %186 = tpu.matmul %183, %185, %cst_74 {dimension_numbers = #tpu.dot_dimension_numbers<[1], [0], [0], [1], [0, 0, 1, 1], [], []>} : vector<8x64xbf16>, vector<64x32xbf16>, vector<8x32xf32> -> vector<8x32xf32>
    %c0_75 = arith.constant 0 : index
    %c0_76 = arith.constant 0 : index
    %c0_77 = arith.constant 0 : index
    %187 = vector.load %arg15[%c0_75, %c0_76, %c0_77] : memref<1x1x32xf32, #tpu.memory_space<vmem>>, vector<1x1x32xf32>
    %188 = vector.shape_cast %187 : vector<1x1x32xf32> to vector<1x32xf32>
    %189 = vector.broadcast %188 : vector<1x32xf32> to vector<8x32xf32>
    %190 = arith.addf %186, %189 : vector<8x32xf32>
    %191 = arith.addf %190, %134 : vector<8x32xf32>
    %c0_78 = arith.constant 0 : index
    %c0_79 = arith.constant 0 : index
    %c0_80 = arith.constant 0 : index
    %192 = vector.load %arg16[%c0_78, %c0_79, %c0_80] : memref<1x1x32xf32, #tpu.memory_space<vmem>>, vector<1x1x32xf32>
    %193 = vector.shape_cast %192 : vector<1x1x32xf32> to vector<1x32xf32>
    %c0_81 = arith.constant 0 : index
    %c0_82 = arith.constant 0 : index
    %c0_83 = arith.constant 0 : index
    %194 = vector.load %arg17[%c0_81, %c0_82, %c0_83] : memref<1x1x32xf32, #tpu.memory_space<vmem>>, vector<1x1x32xf32>
    %195 = vector.shape_cast %194 : vector<1x1x32xf32> to vector<1x32xf32>
    %cst_84 = arith.constant dense<0.000000e+00> : vector<8xf32>
    %196 = vector.multi_reduction <add>, %191, %cst_84 [1] : vector<8x32xf32> to vector<8xf32>
    %197 = vector.shape_cast %196 : vector<8xf32> to vector<8x1xf32>
    %cst_85 = arith.constant 3.200000e+01 : f32
    %198 = vector.broadcast %cst_85 : f32 to vector<8x1xf32>
    %199 = arith.divf %197, %198 : vector<8x1xf32>
    %200 = vector.broadcast %199 : vector<8x1xf32> to vector<8x32xf32>
    %201 = arith.subf %191, %200 : vector<8x32xf32>
    %202 = arith.mulf %201, %201 : vector<8x32xf32>
    %cst_86 = arith.constant dense<0.000000e+00> : vector<8xf32>
    %203 = vector.multi_reduction <add>, %202, %cst_86 [1] : vector<8x32xf32> to vector<8xf32>
    %204 = vector.shape_cast %203 : vector<8xf32> to vector<8x1xf32>
    %cst_87 = arith.constant 3.200000e+01 : f32
    %205 = vector.broadcast %cst_87 : f32 to vector<8x1xf32>
    %206 = arith.divf %204, %205 : vector<8x1xf32>
    %207 = vector.broadcast %199 : vector<8x1xf32> to vector<8x32xf32>
    %208 = arith.subf %191, %207 : vector<8x32xf32>
    %cst_88 = arith.constant 9.99999996E-13 : f32
    %209 = vector.broadcast %cst_88 : f32 to vector<8x1xf32>
    %210 = arith.addf %206, %209 : vector<8x1xf32>
    %211 = math.rsqrt %210 : vector<8x1xf32>
    %212 = vector.broadcast %211 : vector<8x1xf32> to vector<8x32xf32>
    %213 = arith.mulf %208, %212 : vector<8x32xf32>
    %214 = vector.broadcast %193 : vector<1x32xf32> to vector<8x32xf32>
    %215 = arith.mulf %213, %214 : vector<8x32xf32>
    %216 = vector.broadcast %195 : vector<1x32xf32> to vector<8x32xf32>
    %217 = arith.addf %215, %216 : vector<8x32xf32>
    %c0_89 = arith.constant 0 : index
    %c0_90 = arith.constant 0 : index
    %218 = vector.load %arg23[%c0_89, %c0_90] : memref<8x32xf32, #tpu.memory_space<vmem>>, vector<8x32xf32>
    tpu.vector_store %arg23[%c0_89, %c0_90], %217 {strides = array<i32>} : memref<8x32xf32, #tpu.memory_space<vmem>>, vector<8x32xf32>,
    %c1_i32 = arith.constant 1 : i32
    %219 = arith.cmpi eq, %arg1, %c1_i32 : i32
    %220 = arith.extui %219 : i1 to i32
    %c0_i32_91 = arith.constant 0 : i32
    %221 = arith.cmpi ne, %220, %c0_i32_91 : i32
    scf.if %221 {
      %222 = vector.extract_strided_slice %217 {offsets = [0, 0], sizes = [1, 32], strides = [1, 1]} : vector<8x32xf32> to vector<1x32xf32>
      %223 = arith.truncf %222 : vector<1x32xf32> to vector<1x32xbf16>
      %c0_92 = arith.constant 0 : index
      %c0_93 = arith.constant 0 : index
      %224 = vector.load %arg18[%c0_92, %c0_93] : memref<32x32xbf16, #tpu.memory_space<vmem>>, vector<32x32xbf16>
      %cst_94 = arith.constant dense<0.000000e+00> : vector<1x32xf32>
      %225 = tpu.matmul %223, %224, %cst_94 {dimension_numbers = #tpu.dot_dimension_numbers<[1], [0], [0], [1], [0, 0, 1, 1], [], []>} : vector<1x32xbf16>, vector<32x32xbf16>, vector<1x32xf32> -> vector<1x32xf32>
      %c0_95 = arith.constant 0 : index
      %c0_96 = arith.constant 0 : index
      %226 = vector.load %arg19[%c0_95, %c0_96] : memref<1x32xf32, #tpu.memory_space<vmem>>, vector<1x32xf32>
      %227 = arith.addf %225, %226 : vector<1x32xf32>
      %228 = math.tanh %227 : vector<1x32xf32>
      %229 = arith.truncf %228 : vector<1x32xf32> to vector<1x32xbf16>
      %c0_97 = arith.constant 0 : index
      %c0_98 = arith.constant 0 : index
      %230 = vector.load %arg20[%c0_97, %c0_98] : memref<32x2xbf16, #tpu.memory_space<vmem>>, vector<32x2xbf16>
      %cst_99 = arith.constant dense<0.000000e+00> : vector<1x2xf32>
      %231 = tpu.matmul %229, %230, %cst_99 {dimension_numbers = #tpu.dot_dimension_numbers<[1], [0], [0], [1], [0, 0, 1, 1], [], []>} : vector<1x32xbf16>, vector<32x2xbf16>, vector<1x2xf32> -> vector<1x2xf32>
      %c0_100 = arith.constant 0 : index
      %c0_101 = arith.constant 0 : index
      %232 = vector.load %arg21[%c0_100, %c0_101] : memref<1x2xf32, #tpu.memory_space<vmem>>, vector<1x2xf32>
      %233 = arith.addf %231, %232 : vector<1x2xf32>
      %c0_102 = arith.constant 0 : index
      %c0_103 = arith.constant 0 : index
      %c0_104 = arith.constant 0 : index
      %234 = vector.load %arg22[%c0_102, %c0_103, %c0_104] : memref<1x1x2xf32, #tpu.memory_space<vmem>>, vector<1x1x2xf32>
      %235 = vector.shape_cast %234 : vector<1x1x2xf32> to vector<1x2xf32>
      %236 = vector.shape_cast %233 : vector<1x2xf32> to vector<1x1x2xf32>
      tpu.vector_store %arg22[%c0_102, %c0_103, %c0_104], %236 {strides = array<i32>} : memref<1x1x2xf32, #tpu.memory_space<vmem>>, vector<1x1x2xf32>,
    } else {
    }
    return
  }
  func.func @transform_0(%arg0: i32, %arg1: i32) -> (i32, i32) {
    %c0_i32 = arith.constant 0 : i32
    %c0_i32_0 = arith.constant 0 : i32
    return %arg0, %c0_i32 : i32, i32
  }
  func.func @transform_1(%arg0: i32, %arg1: i32) -> (i32, i32, i32) {
    %c0_i32 = arith.constant 0 : i32
    %c0_i32_0 = arith.constant 0 : i32
    %c0_i32_1 = arith.constant 0 : i32
    return %arg0, %c0_i32, %c0_i32_0 : i32, i32, i32
  }
  func.func @transform_2(%arg0: i32, %arg1: i32) -> (i32, i32) {
    %c0_i32 = arith.constant 0 : i32
    %c0_i32_0 = arith.constant 0 : i32
    %c0_i32_1 = arith.constant 0 : i32
    return %c0_i32, %c0_i32_0 : i32, i32
  }
  func.func @transform_3(%arg0: i32, %arg1: i32) -> (i32, i32) {
    %c0_i32 = arith.constant 0 : i32
    %c0_i32_0 = arith.constant 0 : i32
    %c0_i32_1 = arith.constant 0 : i32
    return %c0_i32, %c0_i32_0 : i32, i32
  }
  func.func @transform_4(%arg0: i32, %arg1: i32) -> (i32, i32, i32) {
    %c0_i32 = arith.constant 0 : i32
    %c0_i32_0 = arith.constant 0 : i32
    %c0_i32_1 = arith.constant 0 : i32
    return %arg1, %c0_i32, %c0_i32_0 : i32, i32, i32
  }
  func.func @transform_5(%arg0: i32, %arg1: i32) -> (i32, i32, i32) {
    %c0_i32 = arith.constant 0 : i32
    %c0_i32_0 = arith.constant 0 : i32
    %c0_i32_1 = arith.constant 0 : i32
    return %arg1, %c0_i32, %c0_i32_0 : i32, i32, i32
  }
  func.func @transform_6(%arg0: i32, %arg1: i32) -> (i32, i32, i32) {
    %c0_i32 = arith.constant 0 : i32
    %c0_i32_0 = arith.constant 0 : i32
    %c0_i32_1 = arith.constant 0 : i32
    return %arg1, %c0_i32, %c0_i32_0 : i32, i32, i32
  }
  func.func @transform_7(%arg0: i32, %arg1: i32) -> (i32, i32, i32) {
    %c0_i32 = arith.constant 0 : i32
    %c0_i32_0 = arith.constant 0 : i32
    %c0_i32_1 = arith.constant 0 : i32
    return %arg1, %c0_i32, %c0_i32_0 : i32, i32, i32
  }
  func.func @transform_8(%arg0: i32, %arg1: i32) -> (i32, i32, i32) {
    %c0_i32 = arith.constant 0 : i32
    %c0_i32_0 = arith.constant 0 : i32
    %c0_i32_1 = arith.constant 0 : i32
    return %arg1, %c0_i32, %c0_i32_0 : i32, i32, i32
  }
  func.func @transform_9(%arg0: i32, %arg1: i32) -> (i32, i32, i32) {
    %c0_i32 = arith.constant 0 : i32
    %c0_i32_0 = arith.constant 0 : i32
    %c0_i32_1 = arith.constant 0 : i32
    return %arg1, %c0_i32, %c0_i32_0 : i32, i32, i32
  }
  func.func @transform_10(%arg0: i32, %arg1: i32) -> (i32, i32, i32) {
    %c0_i32 = arith.constant 0 : i32
    %c0_i32_0 = arith.constant 0 : i32
    %c0_i32_1 = arith.constant 0 : i32
    return %arg1, %c0_i32, %c0_i32_0 : i32, i32, i32
  }
  func.func @transform_11(%arg0: i32, %arg1: i32) -> (i32, i32, i32) {
    %c0_i32 = arith.constant 0 : i32
    %c0_i32_0 = arith.constant 0 : i32
    %c0_i32_1 = arith.constant 0 : i32
    return %arg1, %c0_i32, %c0_i32_0 : i32, i32, i32
  }
  func.func @transform_12(%arg0: i32, %arg1: i32) -> (i32, i32, i32) {
    %c0_i32 = arith.constant 0 : i32
    %c0_i32_0 = arith.constant 0 : i32
    %c0_i32_1 = arith.constant 0 : i32
    return %arg1, %c0_i32, %c0_i32_0 : i32, i32, i32
  }
  func.func @transform_13(%arg0: i32, %arg1: i32) -> (i32, i32, i32) {
    %c0_i32 = arith.constant 0 : i32
    %c0_i32_0 = arith.constant 0 : i32
    %c0_i32_1 = arith.constant 0 : i32
    return %arg1, %c0_i32, %c0_i32_0 : i32, i32, i32
  }
  func.func @transform_14(%arg0: i32, %arg1: i32) -> (i32, i32, i32) {
    %c0_i32 = arith.constant 0 : i32
    %c0_i32_0 = arith.constant 0 : i32
    %c0_i32_1 = arith.constant 0 : i32
    return %arg1, %c0_i32, %c0_i32_0 : i32, i32, i32
  }
  func.func @transform_15(%arg0: i32, %arg1: i32) -> (i32, i32, i32) {
    %c0_i32 = arith.constant 0 : i32
    %c0_i32_0 = arith.constant 0 : i32
    %c0_i32_1 = arith.constant 0 : i32
    return %arg1, %c0_i32, %c0_i32_0 : i32, i32, i32
  }
  func.func @transform_16(%arg0: i32, %arg1: i32) -> (i32, i32) {
    %c0_i32 = arith.constant 0 : i32
    %c0_i32_0 = arith.constant 0 : i32
    %c0_i32_1 = arith.constant 0 : i32
    return %c0_i32, %c0_i32_0 : i32, i32
  }
  func.func @transform_17(%arg0: i32, %arg1: i32) -> (i32, i32) {
    %c0_i32 = arith.constant 0 : i32
    %c0_i32_0 = arith.constant 0 : i32
    %c0_i32_1 = arith.constant 0 : i32
    return %c0_i32, %c0_i32_0 : i32, i32
  }
  func.func @transform_18(%arg0: i32, %arg1: i32) -> (i32, i32) {
    %c0_i32 = arith.constant 0 : i32
    %c0_i32_0 = arith.constant 0 : i32
    %c0_i32_1 = arith.constant 0 : i32
    return %c0_i32, %c0_i32_0 : i32, i32
  }
  func.func @transform_19(%arg0: i32, %arg1: i32) -> (i32, i32) {
    %c0_i32 = arith.constant 0 : i32
    %c0_i32_0 = arith.constant 0 : i32
    %c0_i32_1 = arith.constant 0 : i32
    return %c0_i32, %c0_i32_0 : i32, i32
  }
  func.func @transform_20(%arg0: i32, %arg1: i32) -> (i32, i32, i32) {
    %c0_i32 = arith.constant 0 : i32
    %c0_i32_0 = arith.constant 0 : i32
    %c0_i32_1 = arith.constant 0 : i32
    return %arg0, %c0_i32, %c0_i32_0 : i32, i32, i32
  }
}

</mosaic_0001>

<bundles_post_ra>
// kernel: table_bert_forward.1
= control target key start
LH: loop header
LB: loop body
LE: loop exit
PB: predicated region body
PF: predicated region fallthrough
CT: control target
= control target key end

     0   :  { %s2986_s0 = inlined_call_operand.vmem [shape: f32[16,32], index: 0, kind: input, shape index: {}]   ;;  %s2987_s1 = inlined_call_operand.vmem [shape: f32[2,1,8], index: 1, kind: input, shape index: {}]   ;;  %s2988_s2 = inlined_call_operand.vmem [shape: f32[1,32], index: 2, kind: input, shape index: {}]   ;;  %s2989_s3 = inlined_call_operand.vmem [shape: f32[1,32], index: 3, kind: input, shape index: {}]   ;;  %s2990_s4 = inlined_call_operand.vmem [shape: bf16[2,32,96], index: 4, kind: input, shape index: {}]   ;;  %s2991_s5 = inlined_call_operand.vmem [shape: f32[2,1,96], index: 5, kind: input, shape index: {}]   ;;  %s2992_s6 = inlined_call_operand.vmem [shape: bf16[2,32,32], index: 6, kind: input, shape index: {}]   ;;  %s2993_s7 = inlined_call_operand.vmem [shape: f32[2,1,32], index: 7, kind: input, shape index: {}]   ;;  %s2994_s8 = inlined_call_operand.vmem [shape: f32[2,1,32], index: 8, kind: input, shape index: {}]   ;;  %s2995_s9 = inlined_call_operand.vmem [shape: f32[2,1,32], index: 9, kind: input, shape index: {}]   ;;  %s2996_s10 = inlined_call_operand.vmem [shape: bf16[2,32,64], index: 10, kind: input, shape index: {}]   ;;  %s2997_s11 = inlined_call_operand.vmem [shape: f32[2,1,64], index: 11, kind: input, shape index: {}]   ;;  %s2998_s12 = inlined_call_operand.vmem [shape: bf16[2,64,32], index: 12, kind: input, shape index: {}]   ;;  %s2999_s13 = inlined_call_operand.vmem [shape: f32[2,1,32], index: 13, kind: input, shape index: {}]   ;;  %s3000_s14 = inlined_call_operand.vmem [shape: f32[2,1,32], index: 14, kind: input, shape index: {}]   ;;  %s3001_s15 = inlined_call_operand.vmem [shape: f32[2,1,32], index: 15, kind: input, shape index: {}]   ;;  %s3002_s16 = inlined_call_operand.vmem [shape: bf16[32,32], index: 16, kind: input, shape index: {}]   ;;  %s3003_s17 = inlined_call_operand.vmem [shape: f32[1,32], index: 17, kind: input, shape index: {}]   ;;  %s3004_s18 = inlined_call_operand.vmem [shape: bf16[32,2], index: 18, kind: input, shape index: {}]   ;;  %s3005_s19 = inlined_call_operand.vmem [shape: f32[1,2], index: 19, kind: input, shape index: {}]   ;;  %s3006_s20 = inlined_call_operand.hbm [shape: f32[2,1,2], index: 20, kind: output, shape index: {}]  }
   0x1   :  { %3022 = sst [smem:[#allocation18_spill]] %s2986_s0 }
   0x2   :  { %3023 = sst [smem:[#allocation19_spill]] %s2987_s1 }
   0x3   :  { %3024 = sst [smem:[#allocation20_spill]] %s2988_s2 }
   0x4   :  { %3025 = sst [smem:[#allocation21_spill]] %s2989_s3 }
   0x5   :  { %3026 = sst [smem:[#allocation22_spill]] %s2990_s4 }
   0x6   :  { %3027 = sst [smem:[#allocation23_spill]] %s2992_s6 }
   0x7   :  { %3028 = sst [smem:[#allocation24_spill]] %s2995_s9 }
   0x8   :  { %3029 = sst [smem:[#allocation25_spill]] %s2996_s10 }
   0x9   :  { %3030 = sst [smem:[#allocation26_spill]] %s3000_s14 }
   0xa   :  { %3031 = sst [smem:[#allocation27_spill]] %s3001_s15 }
   0xb   :  { %3032 = sst [smem:[#allocation28_spill]] %s3002_s16 }
   0xc   :  { %3033 = sst [smem:[#allocation29_spill]] %s3003_s17 }
   0xd   :  { %3034 = sst [smem:[#allocation30_spill]] %s3004_s18 }
   0xe   :  { %3035 = sst [smem:[#allocation31_spill]] %s3005_s19 }
   0xf   :  { %3036 = sst [smem:[#allocation32_spill]] %s3006_s20 }
  0x10   :  { %25 = vsyncpa [#allocation4], 0 }
  0x11   :  { %27 = vsyncpa [#allocation4 + $0x1], 0  ;;  %s2611_s1 = smov 0   ;;  %s2613_s22 = smov 0  }
  0x12   :  { %s2615_s23 = smov 0   ;;  %s2617_s24 = smov 0  }
  0x13   :  { %s2619_s2 = smov 0   ;;  %s2621_s25 = smov 0  }
  0x14   :  { %s2623_s3 = smov 0   ;;  %s2625_s26 = smov 0  }
  0x15 LB: > { %3037 = sst [smem:[#allocation6_spill]] %s2457_s1  ;;  %s2062_s27 = sadd.s32 4294967295, %s2485_s26   ;;  %s2485_s26 = sphi %s2625_s26, %s33_s26   ;;  %s2481_s3 = sphi %s2623_s3, %s3090_s3   ;;  %s2477_s25 = sphi %s2621_s25, %s3089_s25   ;;  %s2473_s2 = sphi %s2619_s2, %s3093_s2   ;;  %s2469_s24 = sphi %s2617_s24, %s3087_s24   ;;  %s2465_s23 = sphi %s2615_s23, %s3086_s23   ;;  %s2461_s22 = sphi %s2613_s22, %s3092_s22   ;;  %s2457_s1 = sphi %s2611_s1, %s3091_s1  }
  0x16   : > { %3038 = sst [smem:[#allocation7_spill]] %s2465_s23  ;;  %s2063_s28 = sadd.s32 4294967294, %s2485_s26  }
  0x17   : > { %3039 = sst [smem:[#allocation8_spill]] %s2469_s24  ;;  %s42_s4 = sadd.s32 1, %s2477_s25 }
  0x18   : > { %3040 = sst [smem:[#allocation9_spill]] %s2473_s2  ;;  %p43_p0 = scmp.ge.s32.totalorder %s42_s4, 2 }
  0x19   : > { %3041 = sst [smem:[#allocation10_spill]] %s2477_s25  ;;  %s45_s29 = sadd.s32 1, %s2481_s3 }
  0x1a   : > { %3042 = sst [smem:[#allocation11_spill]] %s2481_s3  ;;  %p552_p1 = scmp.ne.s32.totalorder %s2465_s23, %s2461_s22 }
  0x1b   : > { %3043 = sst [smem:[#allocation12_spill]] %s2485_s26  ;;  %p553_p2 = scmp.eq.s32.totalorder %s2062_s27, 3 }
  0x1c   : > { %s3095_s4 = smov (%p43_p0, %s42_s4), 0  ;;  %s3097_s29 = smov (!%p43_p0, %s45_s29), %s2481_s3 }
  0x1d   : > { %3044 = sst [smem:[#allocation13_spill]] %s3095_s4  ;;  %p2660_p3 = por %p553_p2, %p552_p1 }
  0x1e   : > { %p558_p4 = scmp.ne.s32.totalorder %s2461_s22, %s2457_s1  ;;  %p47_p5 = scmp.ge.s32.totalorder %s3097_s29, 2 }
  0x1f   : > { %s3045_s30 = scalar_select %p2660_p3, 1, 0 }
  0x20   : > { %p559_p6 = scmp.eq.s32.totalorder %s2063_s28, 3  ;;  %p2066_p7 = scmp.ge.s32.totalorder %s2485_s26, 1 }
  0x21   : > { %3046 = sst [smem:[#allocation14_spill]] %s3045_s30  ;;  %p688_p8 = scmp.lt.s32.totalorder %s2485_s26, 5 }
  0x22   : > { %s3099_s29 = smov (%p47_p5, %s3097_s29), 0  ;;  %p2670_p9 = por %p559_p6, %p558_p4 }
  0x23   : > { %3047 = sst [smem:[#allocation15_spill]] %s3099_s29  ;;  %p689_p10 = pnand %p2066_p7, %p688_p8 }
  0x24   : > { %s3048_s0 = scalar_select %p2670_p9, 1, 0 }
  0x25   : > { %s539_s21 = ssub.s32 %s2481_s3, %s3099_s29  ;;  %s542_s27 = sadd.s32 1, %s2465_s23 }
  0x26   : > { %3049 = sst [smem:[#allocation16_spill]] %s3048_s0  ;;  %p540_p11 = scmp.eq.s32.totalorder %s539_s21, 0 }
  0x27   : > { %692 = sbr.rel (%p689_p10) target bundleno = 3272 (0xcc8), region = 100  ;;  %p791_p12 = scmp.lt.s32.totalorder (!%p689_p10), %s2473_s2, 1 }
  0x28   : > { %s2678_s4 = scalar_select %p540_p11, %s2465_s23, %s542_s27  }
  0x29   : > { %p798_p13 = scmp.lt.s32.totalorder (!%p689_p10), %s2469_s24, 1  ;;  %s3052_s1 = sld [smem:[#allocation18_spill]] (!%p689_p10) }
  0x2a   : > { %3050 = sst [smem:[#allocation17_spill]] %s2678_s4  ;;  %s3054_s6 = sld [smem:[#allocation23_spill]] (!%p689_p10) }
  0x2b   : > { %s3053_s19 = sld [smem:[#allocation22_spill]] (!%p689_p10)  ;;  %s3056_s10 = sld [smem:[#allocation25_spill]] (!%p689_p10) }
  0x2c   : > { %s3057_s30 = sld [smem:[#allocation26_spill]] (!%p689_p10)  ;;  %s3059_s14 = sand.u32 (!%p689_p10), 1, %s2461_s22  }
  0x2d   : > { %s2753_s15 = scalar_lea.vmem (!%p689_p10), [#allocation3], %s3059_s14 }
  0x2e   : > { %s2684_s25 = scalar_select %p791_p12, %s2473_s2, 1 }
  0x2f   : > { %s2687_s0 = scalar_select %p798_p13, %s2469_s24, 1 }
  0x30   : > { %s2067_s21 = sshll.u32 %s2684_s25, 3  ;;  %s3060_s24 = sld [smem:[#allocation8_spill]] }
  0x31   : > { %s794_s26 = scalar_lea.vmem %s3052_s1, %s2067_s21  ;;  %s2120_s20 = sshll.u32 %s2687_s0, 4 }
  0x32   : > { %s2701_s17 = scalar_lea.vmem %s3053_s19, %s2120_s20  ;;  %s2710_s28 = scalar_lea.vmem %s3054_s6, %s2120_s20 }
  0x33   : > { %s2727_s18 = scalar_lea.vmem %s3056_s10, %s2120_s20  ;;  %s2123_s6 = sshll.u32 %s2687_s0, 5 }
  0x34   : > { %s835_s23 = scalar_lea.vmem %s2999_s13, %s2687_s0  ;;  %s2741_s21 = scalar_lea.vmem %s2998_s12, %s2123_s6 }
  0x35   : > { %s838_s3 = scalar_lea.vmem %s3057_s30, %s2687_s0  ;;  %s3058_s10 = sld [smem:[#allocation27_spill]] }
  0x36   : > { %p2076_p0 = scmp.ne.s32.totalorder %s3060_s24, 0 }
  0x37   : > { %v847_v0 = vld [vmem:[%s794_s26] sm:$0xff] (!%p2076_p0)  ;;  %vm850_vm0 = vcmask (!%p2076_p0), 261120   ;;  %s3061_s24 = sld [smem:[#allocation20_spill]] (!%p2076_p0)  ;;  %s3062_s29 = sld [smem:[#allocation21_spill]] (!%p2076_p0) }
  0x38   : > { %846 = sbr.rel (%p2076_p0) target bundleno = 370 (0x172), region = 104  ;;  %v851_v1 = vsel (!%p2076_p0), %vm850_vm0, %v847_v0, 0.0 }
  0x39   : > { %852 = vadd.xlane.f32.xlu0 (!%p2076_p0), %v851_v1 }
  0x3b   : > { %s841_s9 = scalar_lea.vmem %s3058_s10, %s2687_s0 }
  0x3d   : > { %v2077_v11 = vld [vmem:[%s3061_s24] ss:$0 sm:$0xff] (!%p2076_p0) }
  0x3e   : > { %v2078_v13 = vld [vmem:[%s3062_s29] ss:$0 sm:$0xff] (!%p2076_p0) }
  0xc6   : > { %v853_v2 = vpop.xlane.xlu0 %852 }
  0xc7   : > { %v855_v3 = vmul.f32 0.03125, %v853_v2 }
  0xc9   : > { %v856_v4 = vsub.f32 %v847_v0, %v855_v3 }
  0xcb   : > { %v857_v5 = vmul.f32 %v856_v4, %v856_v4 }
  0xcd   : > { %v858_v6 = vsel %vm850_vm0, %v857_v5, 0.0 }
  0xce   : > { %859 = vadd.xlane.f32.xlu0 %v858_v6 }
 0x15b   : > { %v860_v7 = vpop.xlane.xlu0 %859 }
 0x15c   : > { %v861_v8 = vmul.f32 0.03125, %v860_v7 }
 0x15e   : > { %v862_v9 = vadd.f32 1e-12, %v861_v8 }
 0x160   : > { %2349 = vrsqrt.f32 %v862_v9 }
 0x16a   : > { %v2350_v10 = vpop.eup %2349 }
 0x16b   : > { %v864_v12 = vmul.f32 %v2350_v10, %v856_v4 }
 0x16d   : > { %v871_v14 = vmul.f32 %v2077_v11, %v864_v12 }
 0x16f   : > { %v878_v15 = vadd.f32 %v2078_v13, %v871_v14 }
 0x171   : > { %879 = vst.msk [vmem:[#allocation2] sm:$0xff] %vm850_vm0, %v878_v15 }
 0x172 PF: > { %v2351_v16 = vld [vmem:[%s2701_s17] sm:$0xff]   ;;  %v2487_v17 = vmov 0.0   ;;  %v2352_v18 = vld [vmem:[%s2701_s17 + $0x8] sm:$0xff]   ;;  %vm2488_vm1 = vmmov 0   ;;  %vm905_vm2 = vcmask 261120   ;;  %s3063_s1 = scalar_lea.vmem %s2991_s5, %s2687_s0  ;;  %s2489_s4 = smov 96  }
 0x173   : > { %2160 = vmatprep.subr.bf16.mxu0 %v2487_v17  ;;  %2168 = vmatprep.subr.bf16.mxu1 %v2487_v17  ;;  %v2079_v21 = vld [vmem:[%s3063_s1] ss:$0 sm:$0xff]  ;;  %s2490_s2 = smov 120   ;;  %s2491_s19 = smov 88   ;;  %vm962_vm3 = vcmask 64512   ;;  %vm1024_vm4 = vcmask 1043456  }
 0x174   : > { %2161 = vmatpush3.bf16.msra.mxu0 %v2351_v16  ;;  %2164 = vmatprep.mubr.msk.bf16.mxu0 %vm2488_vm1, %v2487_v17  ;;  %s2492_s20 = smov 80   ;;  %s2493_s16 = smov 112   ;;  %vm1414_vm5 = vcmask 130048   ;;  %vm1416_vm6 = vcmask 195584   ;;  %vm1650_vm8 = vcmask 523264  }
 0x175   : > { %2162 = vmatprep.subr.bf16.mxu0 %v2487_v17  ;;  %2170 = vmatprep.mubr.msk.bf16.mxu1 %vm2488_vm1, %v2487_v17  ;;  %s2494_s14 = smov 72   ;;  %s2495_s6 = smov 104  }
 0x176   : > { %s3064_s26 = sld [smem:[#allocation19_spill]]  ;;  %s2497_s29 = smov 64  }
 0x177   : > { %s2498_s17 = smov 40   ;;  %s2499_s27 = smov 48  }
 0x178   : > { %v2771_v19 = vld [vmem:[#allocation2] sm:$0xff]  ;;  %2163 = vmatpush3.bf16.msra.mxu0 %v2352_v18  ;;  %s2500_s1 = smov 8  }
 0x179   : > { %v881_v20 = vpack.c.bf16 %v2771_v19, %v2771_v19  ;;  %2174 = vmatprep.subr.bf16.mxu0 %v2487_v17 }
 0x17b   : > { %2165 = vmatmul.mubr.msk.bf16.vlgmr.msra.gmra.mrb[0].mxu0 %vm905_vm2, %v881_v20 }
 0x17c   : > { %2176 = vmatprep.mubr.msk.bf16.mxu0 %vm2488_vm1, %v2487_v17  ;;  %s3065_s30 = scalar_lea.vmem %s3064_s26, %s2684_s25  ;;  %s2496_s25 = smov 56  }
 0x17d   : > { %v2083_v41 = vld [vmem:[%s3065_s30] ss:$0 sm:$0xff]  ;;  %s3068_s26 = sld [smem:[#allocation24_spill]] }
 0x183   : > { %s3069_s30 = scalar_lea.vmem %s3068_s26, %s2687_s0 }
 0x24e   : > { %v943_v22 = vpop.f32.mrb[0].mxu0 }
 0x24f   : > { %v944_v23 = vadd.f32 %v2079_v21, %v943_v22  ;;  %v2166_v24 = vpop.f32.mrb[1].mxu0 }
 0x250   : > { %v946_v25 = vpop.f32.mrb[2].mxu0 }
 0x251   : > { %v2787_v26 = vpack.c.bf16 %v944_v23, %v944_v23  ;;  %v951_v27 = vmul.f32 0.35355338, %v944_v23  ;;  %v2167_v28 = vpop.f32.mrb[3].mxu0 }
 0x253   : > { %v952_v29 = vpack.c.bf16 %v951_v27, %v951_v27  ;;  %960 = vrot.lane.b32.xlu0 %v2787_v26, %s2489_s4  ;;  %s2501_s4 = smov 16  }
 0x255   : > { %1071 = vrot.lane.b32.xlu1 %v952_v29, %s2490_s2  ;;  %s2502_s2 = smov 24  }
 0x257   : > { %1073 = vrot.lane.b32.xlu0 %v2787_v26, %s2491_s19  ;;  %s3073_s19 = sld [smem:[#allocation8_spill]] }
 0x259   : > { %1183 = vrot.lane.b32.xlu1 %v2787_v26, %s2492_s20  ;;  %s3066_s20 = scalar_lea.vmem %s2993_s7, %s2687_s0 }
 0x25b   : > { %1181 = vrot.lane.b32.xlu0 %v952_v29, %s2493_s16 }
 0x25d   : > { %1293 = vrot.lane.b32.xlu1 %v2787_v26, %s2494_s14  ;;  %p2110_p1 = scmp.ne.s32.totalorder %s3073_s19, 1 }
 0x25e   : > { %s3074_s14 = sld [smem:[#allocation28_spill]] (!%p2110_p1)  ;;  %vm2504_vm9 = vmmov (!%p2110_p1), 0   ;;  %s3075_s10 = sld [smem:[#allocation30_spill]] (!%p2110_p1)  ;;  %vm1852_vm10 = vcmask (!%p2110_p1), 8192  }
 0x25f   : > { %1291 = vrot.lane.b32.xlu0 %v952_v29, %s2495_s6  ;;  %s3067_s6 = scalar_lea.vmem %s2994_s8, %s2687_s0 }
 0x2c5   : > { %v961_v30 = vpop.permute.xlu0 %960 }
 0x2c6   : > { %v967_v31 = vsel %vm962_vm3, %v961_v30, 0 }
 0x2c7   : > { %2169 = vmatpush3.bf16.xpose.msra.mxu1 %v967_v31  ;;  %v1072_v33 = vpop.permute.xlu1 %1071 }
 0x2c8   : > { %2180 = vmatprep.subr.bf16.mxu1 %v2487_v17 }
 0x2c9   : > { %v1074_v32 = vpop.permute.xlu0 %1073 }
 0x2ca   : > { %v1079_v34 = vsel %vm962_vm3, %v1074_v32, 0 }
 0x2cb   : > { %v1184_v35 = vpop.permute.xlu1 %1183 }
 0x2cc   : > { %v1189_v36 = vsel %vm962_vm3, %v1184_v35, 0 }
 0x2cd   : > { %v1182_v38 = vpop.permute.xlu0 %1181 }
 0x2ce   : > { %2171 = vmatmul.mubr.msk.bf16.vlgmr.msra.gmra.mrb[0].mxu1 %vm962_vm3, %v952_v29 }
 0x2cf   : > { %2181 = vmatpush3.bf16.xpose.msra.mxu1 %v1079_v34  ;;  %2182 = vmatprep.mubr.msk.bf16.mxu1 %vm2488_vm1, %v2487_v17  ;;  %v1294_v37 = vpop.permute.xlu1 %1293 }
 0x2d0   : > { %2192 = vmatprep.subr.bf16.mxu1 %v2487_v17  ;;  %v1299_v39 = vsel %vm962_vm3, %v1294_v37, 0 }
 0x2d1   : > { %v1292_v40 = vpop.permute.xlu0 %1291 }
 0x2d6   : > { %2183 = vmatmul.mubr.msk.bf16.vlgmr.msra.gmra.mrb[4].mxu1 %vm962_vm3, %v1072_v33 }
 0x2d7   : > { %2193 = vmatpush3.bf16.xpose.msra.mxu1 %v1189_v36  ;;  %2194 = vmatprep.mubr.msk.bf16.mxu1 %vm2488_vm1, %v2487_v17 }
 0x2d8   : > { %2204 = vmatprep.subr.bf16.mxu1 %v2487_v17 }
 0x2de   : > { %2195 = vmatmul.mubr.msk.bf16.vlgmr.msra.gmra.mrb[8].mxu1 %vm962_vm3, %v1182_v38 }
 0x2df   : > { %2205 = vmatpush3.bf16.xpose.msra.mxu1 %v1299_v39  ;;  %2206 = vmatprep.mubr.msk.bf16.mxu1 %vm2488_vm1, %v2487_v17 }
 0x2e0   : > { %2216 = vmatprep.subr.bf16.mxu1 %v2487_v17 }
 0x2e6   : > { %2207 = vmatmul.mubr.msk.bf16.vlgmr.msra.gmra.mrb[12].mxu1 %vm962_vm3, %v1292_v40 }
 0x2e7   : > { %2220 = vmatprep.mubr.msk.bf16.mxu1 %vm2488_vm1, %v2487_v17 }
 0x3a1   : > { %v1003_v42 = vpop.f32.mrb[0].mxu1 }
 0x3a2   : > { %v1004_v43 = vadd.f32 %v2083_v41, %v1003_v42  ;;  %v2172_v44 = vpop.f32.mrb[1].mxu1 }
 0x3a3   : > { %v1006_v45 = vpop.f32.mrb[2].mxu1 }
 0x3a4   : > { %v2173_v46 = vpop.f32.mrb[3].mxu1  ;;  %v1009_v47 = vsel %vm962_vm3, %v1004_v43, -inf }
 0x3a5   : > { %1010 = vmax.xlane.f32.xlu1 %v1009_v47 }
 0x3a9   : > { %v1115_v48 = vpop.f32.mrb[4].mxu1 }
 0x3aa   : > { %v1116_v49 = vadd.f32 %v2083_v41, %v1115_v48  ;;  %v2184_v50 = vpop.f32.mrb[5].mxu1  ;;  %v2353_v48 = vld [vmem:[%s2710_s28] sm:$0xff]  }
 0x3ab   : > { %v1118_v51 = vpop.f32.mrb[6].mxu1  ;;  %2217 = vmatpush3.bf16.msra.mxu1 %v2353_v48  ;;  %v2354_v50 = vld [vmem:[%s2710_s28 + $0x8] sm:$0xff]  }
 0x3ac   : > { %v2185_v52 = vpop.f32.mrb[7].mxu1  ;;  %v1121_v53 = vsel %vm962_vm3, %v1116_v49, -inf  ;;  %2218 = vmatprep.subr.bf16.mxu1 %v2487_v17 }
 0x3ad   : > { %1122 = vmax.xlane.f32.xlu0 %v1121_v53 }
 0x3af   : > { %2219 = vmatpush3.bf16.msra.mxu1 %v2354_v50 }
 0x3b0   : > { %2232 = vmatprep.subr.bf16.mxu1 %v2487_v17 }
 0x3b1   : > { %v1225_v54 = vpop.f32.mrb[8].mxu1 }
 0x3b2   : > { %v1226_v55 = vadd.f32 %v2083_v41, %v1225_v54  ;;  %v2196_v56 = vpop.f32.mrb[9].mxu1 }
 0x3b3   : > { %v1228_v57 = vpop.f32.mrb[10].mxu1 }
 0x3b4   : > { %v2197_v58 = vpop.f32.mrb[11].mxu1  ;;  %v1231_v59 = vsel %vm962_vm3, %v1226_v55, -inf }
 0x3b5   : > { %1232 = vmax.xlane.f32.xlu0 %v1231_v59 }
 0x3b6   : > { %1131 = vrot.lane.b32.xlu1 %v2787_v26, %s2496_s25  ;;  %s3076_s25 = sld [smem:[#allocation29_spill]] (!%p2110_p1) }
 0x3b9   : > { %v1335_v60 = vpop.f32.mrb[12].mxu1 }
 0x3ba   : > { %v2208_v61 = vpop.f32.mrb[13].mxu1  ;;  %v1336_v0 = vadd.f32 %v2083_v41, %v1335_v60 }
 0x3bb   : > { %v1338_v62 = vpop.f32.mrb[14].mxu1 }
 0x3bc   : > { %v2209_v63 = vpop.f32.mrb[15].mxu1  ;;  %v1341_v1 = vsel %vm962_vm3, %v1336_v0, -inf }
 0x3cb   : > { %1019 = vrot.lane.b32.xlu0 %v2787_v26, %s2497_s29  ;;  %s3070_s29 = scalar_lea.vmem %s2997_s11, %s2687_s0 }
 0x3cf   : > { %1351 = vrot.lane.b32.xlu0 %v2787_v26, %s2498_s17  ;;  %s3077_s17 = sld [smem:[#allocation31_spill]] (!%p2110_p1) }
 0x3da   : > { %1342 = vmax.xlane.f32.xlu1 %v1341_v1 }
 0x3eb   : > { %1241 = vrot.lane.b32.xlu1 %v2787_v26, %s2499_s27 }
 0x432   : > { %v1011_v2 = vpop.xlane.xlu1 %1010 }
 0x433   : > { %v1012_v3 = vsub.f32 %v1004_v43, %v1011_v2 }
 0x435   : > { %v1013_v4 = vmul.f32 1.442695, %v1012_v3 }
 0x436   : > { %v1132_v14 = vpop.permute.xlu1 %1131 }
 0x437   : > { %2361 = vpow2.f32 %v1013_v4  ;;  %v1137_v20 = vsel %vm1024_vm4, %v1132_v14, 0 }
 0x43a   : > { %v1123_v5 = vpop.xlane.xlu0 %1122 }
 0x43b   : > { %v1124_v6 = vsub.f32 %v1116_v49, %v1123_v5 }
 0x43d   : > { %v1125_v7 = vmul.f32 1.442695, %v1124_v6 }
 0x43f   : > { %2363 = vpow2.f32 %v1125_v7 }
 0x441   : > { %v2362_v11 = vpop.eup %2361 }
 0x442   : > { %v1233_v8 = vpop.xlane.xlu0 %1232  ;;  %v1018_v16 = vpack.c.bf16 %v2362_v11, %v2362_v11  ;;  %v1015_v21 = vsel %vm962_vm3, %v2362_v11, 0.0 }
 0x443   : > { %v1234_v9 = vsub.f32 %v1226_v55, %v1233_v8 }
 0x445   : > { %v1235_v10 = vmul.f32 1.442695, %v1234_v9  ;;  %v2092_v9 = vld [vmem:[%s3066_s20] ss:$0 sm:$0xff] }
 0x446   : > { %v1020_v12 = vpop.permute.xlu0 %1019 }
 0x447   : > { %2365 = vpow2.f32 %v1235_v10  ;;  %v1026_v13 = vsel %vm1024_vm4, %v1020_v12, 0 }
 0x448   : > { %2175 = vmatpush3.bf16.msra.mxu0 %v1026_v13 }
 0x449   : > { %v2364_v15 = vpop.eup %2363  ;;  %2186 = vmatprep.subr.bf16.mxu0 %v2487_v17 }
 0x44a   : > { %v1127_v18 = vsel %vm962_vm3, %v2364_v15, 0.0  ;;  %v1130_v23 = vpack.c.bf16 %v2364_v15, %v2364_v15  ;;  %v1352_v30 = vpop.permute.xlu0 %1351 }
 0x44b   : > { %1128 = vadd.xlane.f32.xlu1 %v1127_v18  ;;  %2177 = vmatmul.mubr.msk.bf16.vlgmr.msra.gmra.mrb[4].mxu0 %vm962_vm3, %v1018_v16  ;;  %v1357_v32 = vsel %vm1024_vm4, %v1352_v30, 0 }
 0x44c   : > { %2187 = vmatpush3.bf16.msra.mxu0 %v1137_v20  ;;  %2188 = vmatprep.mubr.msk.bf16.mxu0 %vm2488_vm1, %v2487_v17 }
 0x44d   : > { %2198 = vmatprep.subr.bf16.mxu0 %v2487_v17 }
 0x44f   : > { %1016 = vadd.xlane.f32.xlu1 %v1015_v21 }
 0x451   : > { %v2366_v22 = vpop.eup %2365 }
 0x452   : > { %v1237_v24 = vsel %vm962_vm3, %v2366_v22, 0.0  ;;  %v1240_v31 = vpack.c.bf16 %v2366_v22, %v2366_v22 }
 0x453   : > { %1238 = vadd.xlane.f32.xlu0 %v1237_v24  ;;  %2189 = vmatmul.mubr.msk.bf16.vlgmr.msra.gmra.mrb[8].mxu0 %vm962_vm3, %v1130_v23  ;;  %v2355_v24 = vld [vmem:[%s2727_s18] sm:$0xff]  }
 0x454   : > { %2200 = vmatprep.mubr.msk.bf16.mxu0 %vm2488_vm1, %v2487_v17 }
 0x467   : > { %v1343_v25 = vpop.xlane.xlu1 %1342 }
 0x468   : > { %v1344_v26 = vsub.f32 %v1336_v0, %v1343_v25  ;;  %v2356_v25 = vld [vmem:[%s2727_s18 + $0x8] sm:$0xff]  }
 0x46a   : > { %v1345_v27 = vmul.f32 1.442695, %v1344_v26 }
 0x46b   : > { %v1242_v28 = vpop.permute.xlu1 %1241 }
 0x46c   : > { %2367 = vpow2.f32 %v1345_v27  ;;  %v1247_v29 = vsel %vm1024_vm4, %v1242_v28, 0 }
 0x46d   : > { %2199 = vmatpush3.bf16.msra.mxu0 %v1247_v29  ;;  %v2096_v29 = vld [vmem:[%s3067_s6] ss:$0 sm:$0xff] }
 0x46e   : > { %2210 = vmatprep.subr.bf16.mxu0 %v2487_v17 }
 0x470   : > { %2201 = vmatmul.mubr.msk.bf16.vlgmr.msra.gmra.mrb[12].mxu0 %vm962_vm3, %v1240_v31  ;;  %v2097_v31 = vld [vmem:[%s3069_s30] ss:$0 sm:$0xff] }
 0x471   : > { %2211 = vmatpush3.bf16.msra.mxu0 %v1357_v32  ;;  %2212 = vmatprep.mubr.msk.bf16.mxu0 %vm2488_vm1, %v2487_v17 }
 0x472   : > { %2224 = vmatprep.subr.bf16.mxu0 %v2487_v17 }
 0x476   : > { %v2368_v33 = vpop.eup %2367 }
 0x477   : > { %v1347_v34 = vsel %vm962_vm3, %v2368_v33, 0.0  ;;  %v1350_v35 = vpack.c.bf16 %v2368_v33, %v2368_v33 }
 0x478   : > { %1348 = vadd.xlane.f32.xlu0 %v1347_v34 }
 0x479   : > { %2213 = vmatmul.mubr.msk.bf16.vlgmr.msra.gmra.mrb[16].mxu0 %vm962_vm3, %v1350_v35  ;;  %v2357_v35 = vld [vmem:[%s2741_s21] sm:$0xff]  }
 0x47a   : > { %2228 = vmatprep.mubr.msk.bf16.mxu0 %vm2488_vm1, %v2487_v17  ;;  %2225 = vmatpush3.bf16.msra.mxu0 %v2355_v24 }
 0x47b   : > { %2226 = vmatprep.subr.bf16.mxu0 %v2487_v17 }
 0x47e   : > { %2227 = vmatpush3.bf16.msra.mxu0 %v2356_v25  ;;  %v2108_v25 = vld [vmem:[%s838_s3] ss:$0 sm:$0xff] }
 0x4d8   : > { %v1129_v36 = vpop.xlane.xlu1 %1128 }
 0x4d9   : > { %2369 = vrcp.f32 %v1129_v36  ;;  %v2358_v36 = vld [vmem:[%s2741_s21 + $0x8] sm:$0xff]  }
 0x4dc   : > { %v1017_v63 = vpop.xlane.xlu1 %1016 }
 0x4e0   : > { %v1239_v47 = vpop.xlane.xlu0 %1238 }
 0x4e1   : > { %2371 = vrcp.f32 %v1239_v47 }
 0x4e3   : > { %v2370_v41 = vpop.eup %2369 }
 0x4eb   : > { %v2372_v51 = vpop.eup %2371 }
 0x505   : > { %v1349_v49 = vpop.xlane.xlu0 %1348 }
 0x506   : > { %2373 = vrcp.f32 %v1349_v49 }
 0x507   : > { %2375 = vrcp.f32 %v1017_v63 }
 0x510   : > { %v2374_v57 = vpop.eup %2373 }
 0x511   : > { %v2376_v0 = vpop.eup %2375 }
 0x51e   : > { %v1062_v37 = vpop.f32.mrb[4].mxu0 }
 0x51f   : > { %v2178_v38 = vpop.f32.mrb[5].mxu0  ;;  %v1069_v3 = vmul.f32 %v2376_v0, %v1062_v37  ;;  %v2359_v37 = vld [vmem:[%s2741_s21 + $0x10] sm:$0xff]  }
 0x520   : > { %v1065_v39 = vpop.f32.mrb[6].mxu0  ;;  %v2360_v38 = vld [vmem:[%s2741_s21 + $0x18] sm:$0xff]  }
 0x521   : > { %v2179_v40 = vpop.f32.mrb[7].mxu0  ;;  %v2098_v39 = vld [vmem:[%s3070_s29] ss:$0 sm:$0xff] }
 0x526   : > { %v1173_v42 = vpop.f32.mrb[8].mxu0 }
 0x527   : > { %v1180_v43 = vmul.f32 %v2370_v41, %v1173_v42  ;;  %v2190_v44 = vpop.f32.mrb[9].mxu0 }
 0x528   : > { %v1176_v45 = vpop.f32.mrb[10].mxu0 }
 0x529   : > { %1402 = vrot.lane.b32.xlu0 %v1180_v43, %s2500_s1  ;;  %v2191_v46 = vpop.f32.mrb[11].mxu0 }
 0x543   : > { %v1283_v52 = vpop.f32.mrb[12].mxu0 }
 0x544   : > { %v1290_v53 = vmul.f32 %v2372_v51, %v1283_v52  ;;  %v2202_v54 = vpop.f32.mrb[13].mxu0 }
 0x545   : > { %v1286_v55 = vpop.f32.mrb[14].mxu0 }
 0x546   : > { %1406 = vrot.lane.b32.xlu1 %v1290_v53, %s2501_s4  ;;  %v2203_v56 = vpop.f32.mrb[15].mxu0 }
 0x54c   : > { %v1393_v58 = vpop.f32.mrb[16].mxu0 }
 0x54d   : > { %v1400_v59 = vmul.f32 %v2374_v57, %v1393_v58  ;;  %v2214_v60 = vpop.f32.mrb[17].mxu0 }
 0x54e   : > { %v1396_v61 = vpop.f32.mrb[18].mxu0 }
 0x54f   : > { %1410 = vrot.lane.b32.xlu1 %v1400_v59, %s2502_s2  ;;  %v2215_v62 = vpop.f32.mrb[19].mxu0 }
 0x59b   : > { %v1403_v1 = vpop.permute.xlu0 %1402 }
 0x59c   : > { %v1413_v4 = vsel %vm962_vm3, %v1069_v3, %v1403_v1 }
 0x5b8   : > { %v1407_v2 = vpop.permute.xlu1 %1406 }
 0x5b9   : > { %v1415_v5 = vsel %vm1414_vm5, %v1413_v4, %v1407_v2 }
 0x5c1   : > { %v1411_v6 = vpop.permute.xlu1 %1410 }
 0x5c2   : > { %v1417_v7 = vsel %vm1416_vm6, %v1415_v5, %v1411_v6  ;;  %v2102_v6 = vld [vmem:[%s835_s23] ss:$0 sm:$0xff] }
 0x5c3   : > { %v1418_v8 = vpack.c.bf16 %v1417_v7, %v1417_v7 }
 0x5c5   : > { %2221 = vmatmul.mubr.msk.bf16.vlgmr.msra.gmra.mrb[16].mxu1 %vm905_vm2, %v1418_v8 }
 0x5c6   : > { %2240 = vmatprep.mubr.msk.bf16.mxu1 %vm2488_vm1, %v2487_v17  ;;  %2233 = vmatpush3.bf16.msra.mxu1 %v2357_v35  ;;  %v1734_v35 = vld [vmem:[%s3076_s25] sm:$0x1] (!%p2110_p1) }
 0x5c7   : > { %2234 = vmatprep.subr.bf16.mxu1 %v2487_v17 }
 0x5ca   : > { %2235 = vmatpush3.bf16.msra.mxu1 %v2358_v36 }
 0x5cb   : > { %2236 = vmatprep.subr.bf16.mxu1 %v2487_v17 }
 0x5ce   : > { %2237 = vmatpush3.bf16.msra.mxu1 %v2359_v37 }
 0x5cf   : > { %2238 = vmatprep.subr.bf16.mxu1 %v2487_v17 }
 0x5d2   : > { %2239 = vmatpush3.bf16.msra.mxu1 %v2360_v38 }
 0x698   : > { %v1479_v10 = vpop.f32.mrb[16].mxu1 }
 0x699   : > { %v1480_v11 = vadd.f32 %v2092_v9, %v1479_v10  ;;  %v2222_v12 = vpop.f32.mrb[17].mxu1 }
 0x69a   : > { %v1482_v13 = vpop.f32.mrb[18].mxu1 }
 0x69b   : > { %v2223_v14 = vpop.f32.mrb[19].mxu1  ;;  %v1485_v15 = vadd.f32 %v1480_v11, %v2771_v19 }
 0x69d   : > { %v1488_v16 = vsel %vm905_vm2, %v1485_v15, 0.0 }
 0x69e   : > { %1489 = vadd.xlane.f32.xlu0 %v1488_v16 }
 0x72b   : > { %v1490_v18 = vpop.xlane.xlu0 %1489 }
 0x72c   : > { %v1492_v20 = vmul.f32 0.03125, %v1490_v18 }
 0x72e   : > { %v1493_v21 = vsub.f32 %v1485_v15, %v1492_v20 }
 0x730   : > { %v1494_v22 = vmul.f32 %v1493_v21, %v1493_v21 }
 0x732   : > { %v1495_v23 = vsel %vm905_vm2, %v1494_v22, 0.0 }
 0x733   : > { %1496 = vadd.xlane.f32.xlu1 %v1495_v23 }
 0x7c0   : > { %v1497_v19 = vpop.xlane.xlu1 %1496 }
 0x7c1   : > { %v1498_v26 = vmul.f32 0.03125, %v1497_v19 }
 0x7c3   : > { %v1499_v27 = vadd.f32 1e-12, %v1498_v26  ;;  %v2109_v26 = vld [vmem:[%s841_s9] ss:$0 sm:$0xff] }
 0x7c5   : > { %2377 = vrsqrt.f32 %v1499_v27 }
 0x7cf   : > { %v2378_v28 = vpop.eup %2377 }
 0x7d0   : > { %v1501_v30 = vmul.f32 %v2378_v28, %v1493_v21 }
 0x7d2   : > { %v1508_v32 = vmul.f32 %v2096_v29, %v1501_v30  ;;  %v2385_v29 = vld [vmem:[%s3074_s14] sm:$0xff] (!%p2110_p1)   ;;  %v2503_v30 = vmov (!%p2110_p1), 0.0  }
 0x7d3   : > { %2244 = vmatprep.subr.bf16.mxu0 (!%p2110_p1), %v2503_v30  ;;  %2252 = vmatprep.subr.bf16.mxu1 (!%p2110_p1), %v2503_v30 }
 0x7d4   : > { %v1515_v33 = vadd.f32 %v2097_v31, %v1508_v32  ;;  %v2386_v31 = vld [vmem:[%s3074_s14 + $0x8] sm:$0xff] (!%p2110_p1)  }
 0x7d6   : > { %v1516_v34 = vpack.c.bf16 %v1515_v33, %v1515_v33 }
 0x7d8   : > { %2229 = vmatmul.mubr.msk.bf16.vlgmr.msra.gmra.mrb[20].mxu0 %vm905_vm2, %v1516_v34  ;;  %v2388_v34 = vld [vmem:[%s3075_s10 + $0x8] sm:$0xff] (!%p2110_p1)  }
 0x7d9   : > { %2245 = vmatpush3.bf16.msra.mxu0 (!%p2110_p1), %v2385_v29  ;;  %2248 = vmatprep.mubr.msk.bf16.mxu0 (!%p2110_p1), %vm2504_vm9, %v2503_v30 }
 0x7da   : > { %2246 = vmatprep.subr.bf16.mxu0 (!%p2110_p1), %v2503_v30 }
 0x7dd   : > { %2247 = vmatpush3.bf16.msra.mxu0 (!%p2110_p1), %v2386_v31 }
 0x8ab   : > { %v1577_v40 = vpop.f32.mrb[20].mxu0 }
 0x8ac   : > { %v1578_v41 = vadd.f32 %v2098_v39, %v1577_v40  ;;  %v2230_v42 = vpop.f32.mrb[21].mxu0 }
 0x8ad   : > { %v1580_v43 = vpop.f32.mrb[22].mxu0 }
 0x8ae   : > { %v1584_v44 = vmul.f32 0.70710677, %v1578_v41  ;;  %v2231_v45 = vpop.f32.mrb[23].mxu0  ;;  %v1583_v2 = vmul.f32 0.5, %v1578_v41  ;;  %v1796_v43 = vld [vmem:[%s3077_s17] sm:$0x1] (!%p2110_p1) }
 0x8b0   : > { %v1585_v46 = vand.u32 2147483647, %v1584_v44  ;;  %vm1605_vm7 = vcmp.ge.f32.partialorder %v1584_v44, 0.0 }
 0x8b2   : > { %v1586_v47 = vmul.f32 0.3275911, %v1585_v46  ;;  %v1599_v49 = vsub.f32 0.0, %v1585_v46 }
 0x8b4   : > { %v1587_v48 = vadd.f32 1.0, %v1586_v47  ;;  %v1600_v17 = vmul.f32 %v1599_v49, %v1585_v46 }
 0x8b6   : > { %2379 = vrcp.f32 %v1587_v48  ;;  %v1601_v53 = vmul.f32 1.442695, %v1600_v17 }
 0x8b8   : > { %2381 = vpow2.f32 %v1601_v53 }
 0x8c0   : > { %v2380_v50 = vpop.eup %2379 }
 0x8c1   : > { %v1590_v51 = vmul.f32 1.0614054, %v2380_v50 }
 0x8c2   : > { %v2382_v61 = vpop.eup %2381 }
 0x8c3   : > { %v1591_v52 = vadd.f32 -1.4531521, %v1590_v51 }
 0x8c5   : > { %v1592_v54 = vmul.f32 %v2380_v50, %v1591_v52 }
 0x8c7   : > { %v1593_v55 = vadd.f32 1.4214138, %v1592_v54 }
 0x8c9   : > { %v1594_v56 = vmul.f32 %v2380_v50, %v1593_v55 }
 0x8cb   : > { %v1595_v57 = vadd.f32 -0.28449672, %v1594_v56 }
 0x8cd   : > { %v1596_v58 = vmul.f32 %v2380_v50, %v1595_v57 }
 0x8cf   : > { %v1597_v59 = vadd.f32 0.2548296, %v1596_v58 }
 0x8d1   : > { %v1598_v60 = vmul.f32 %v2380_v50, %v1597_v59 }
 0x8d3   : > { %v1603_v62 = vmul.f32 %v2382_v61, %v1598_v60 }
 0x8d5   : > { %v1604_v63 = vsub.f32 1.0, %v1603_v62 }
 0x8d7   : > { %v1606_v0 = vsub.f32 0.0, %v1604_v63 }
 0x8d9   : > { %v1607_v1 = vsel %vm1605_vm7, %v1604_v63, %v1606_v0 }
 0x8da   : > { %v1608_v3 = vadd.f32 1.0, %v1607_v1 }
 0x8dc   : > { %v1609_v4 = vmul.f32 %v1608_v3, %v1583_v2 }
 0x8de   : > { %v1610_v5 = vpack.c.bf16 %v1609_v4, %v1609_v4 }
 0x8e0   : > { %2241 = vmatmul.mubr.msk.bf16.vlgmr.msra.gmra.mrb[20].mxu1 %vm1650_vm8, %v1610_v5 }
 0x8e1   : > { %2256 = vmatprep.mubr.msk.bf16.mxu1 (!%p2110_p1), %vm2504_vm9, %v2503_v30 }
 0x9b3   : > { %v1688_v7 = vpop.f32.mrb[20].mxu1 }
 0x9b4   : > { %v1689_v8 = vadd.f32 %v2102_v6, %v1688_v7  ;;  %v2242_v9 = vpop.f32.mrb[21].mxu1 }
 0x9b5   : > { %v1691_v10 = vpop.f32.mrb[22].mxu1 }
 0x9b6   : > { %v2243_v11 = vpop.f32.mrb[23].mxu1  ;;  %v1694_v12 = vadd.f32 %v1689_v8, %v1515_v33  ;;  %v2387_v33 = vld [vmem:[%s3075_s10] sm:$0xff] (!%p2110_p1)  }
 0x9b7   : > { %2253 = vmatpush3.bf16.msra.mxu1 (!%p2110_p1), %v2387_v33 }
 0x9b8   : > { %v1697_v13 = vsel %vm905_vm2, %v1694_v12, 0.0  ;;  %2254 = vmatprep.subr.bf16.mxu1 (!%p2110_p1), %v2503_v30 }
 0x9b9   : > { %1698 = vadd.xlane.f32.xlu0 %v1697_v13 }
 0x9bb   : > { %2255 = vmatpush3.bf16.msra.mxu1 (!%p2110_p1), %v2388_v34 }
 0xa46   : > { %v1699_v14 = vpop.xlane.xlu0 %1698 }
 0xa47   : > { %v1700_v15 = vmul.f32 0.03125, %v1699_v14 }
 0xa49   : > { %v1701_v16 = vsub.f32 %v1694_v12, %v1700_v15 }
 0xa4b   : > { %v1702_v18 = vmul.f32 %v1701_v16, %v1701_v16 }
 0xa4d   : > { %v1703_v20 = vsel %vm905_vm2, %v1702_v18, 0.0 }
 0xa4e   : > { %1704 = vadd.xlane.f32.xlu0 %v1703_v20 }
 0xadb   : > { %v1705_v21 = vpop.xlane.xlu0 %1704 }
 0xadc   : > { %v1706_v22 = vmul.f32 0.03125, %v1705_v21 }
 0xade   : > { %v1707_v23 = vadd.f32 1e-12, %v1706_v22 }
 0xae0   : > { %2383 = vrsqrt.f32 %v1707_v23 }
 0xaea   : > { %v2384_v24 = vpop.eup %2383 }
 0xaeb   : > { %v1709_v19 = vmul.f32 %v2384_v24, %v1701_v16  ;;  %1728 = sbr.rel (%p2110_p1) target bundleno = 3245 (0xcad), region = 108 }
 0xaed   : > { %v1716_v27 = vmul.f32 %v2108_v25, %v1709_v19 }
 0xaef   : > { %v1723_v28 = vadd.f32 %v2109_v26, %v1716_v27 }
 0xaf1   : > { %1724 = vst.msk [vmem:[#allocation2] sm:$0xff] %vm905_vm2, %v1723_v28  ;;  %v1729_v32 = vpack.c.bf16 (!%p2110_p1), %v1723_v28, %v1723_v28 }
 0xaf3   : > { %2249 = vmatmul.mubr.msk.bf16.vlgmr.msra.gmra.mrb[0].mxu0 %vm905_vm2, %v1729_v32 }
 0xbc6   : > { %v1784_v36 = vpop.f32.mrb[0].mxu0 }
 0xbc7   : > { %v1785_v37 = vadd.f32 %v1784_v36, %v1734_v35  ;;  %v2250_v38 = vpop.f32.mrb[1].mxu0 }
 0xbc8   : > { %v1787_v39 = vpop.f32.mrb[2].mxu0 }
 0xbc9   : > { %2389 = vtanh.f32 %v1785_v37  ;;  %v2251_v40 = vpop.f32.mrb[3].mxu0 }
 0xbd3   : > { %v2390_v41 = vpop.eup %2389 }
 0xbd4   : > { %v1791_v42 = vpack.c.bf16 %v2390_v41, %v2390_v41 }
 0xbd6   : > { %2257 = vmatmul.mubr.msk.bf16.vlgmr.msra.gmra.mrb[0].mxu1 %vm905_vm2, %v1791_v42 }
 0xca9   : > { %v1846_v44 = vpop.f32.mrb[0].mxu1 }
 0xcaa   : > { %v1847_v45 = vadd.f32 %v1846_v44, %v1796_v43  ;;  %v2258_v46 = vpop.f32.mrb[1].mxu1 }
 0xcab   : > { %v1849_v47 = vpop.f32.mrb[2].mxu1 }
 0xcac   : > { %1853 = vst.msk [vmem:[%s2753_s15] sm:$0x1] %vm1852_vm10, %v1847_v45  ;;  %v2259_v48 = vpop.f32.mrb[3].mxu1 }
 0xcad PF: > { %s3078_s23 = sld [smem:[#allocation9_spill]]  ;;  %s3080_s28 = sld [smem:[#allocation32_spill]] }
 0xcae   : > { %s1867_s20 = sshll.u32 %s2753_s15, 4  ;;  %s3081_s16 = sand.u32 1, %s2461_s22   ;;  %s1868_s20 = int_to_ptr.vmem [resolvable:$true] %s1867_s20 }
 0xcaf   : > { %s1855_s3 = scalar_lea.sflag [#allocation4], %s3081_s16  ;;  %s2391_s6 = scalar_lea.vmem %s1868_s20, 16 }
 0xcb0   : > { %p2392_p2 = scmp.ne.s32.totalorder %s1868_s20, %s2391_s6  ;;  %s2505_s9 = smov [#allocation3]  }
 0xcb1   : > { %s2395_s0 = sshll.u32 %s2505_s9, 4  ;;  %s2396_s0 = int_to_ptr.vmem [resolvable:$false] %s2395_s0 }
 0xcb2   : > { %p2393_p4 = pnand %p2392_p2, %p2660_p3  ;;  %s2397_s24 = scalar_lea.vmem %s2396_s0, 32 }
 0xcb3   : > { %s2117_s1 = sshll.u32 %s3078_s23, 4  ;;  %p2398_p6 = scmp.lt.s32.totalorder %s1868_s20, %s2396_s0 }
 0xcb4   : > { %s2936_s19 = scalar_lea.hbm %s3080_s28, %s2117_s1  ;;  %p2394_p5 = pneg %p2393_p4 }
 0xcb5   : > { %p2399_p7 = scmp.lt.s32.totalorder %s2397_s24, %s2391_s6 }
 0xcb7   : > { %p2400_p8 = por %p2399_p7, %p2398_p6 }
 0xcb9   : > { %p2401_p10 = pnand %p2400_p8, %p2394_p5 }
 0xcbb   : > { %2404 = shalt.err (!%p2401_p10)
}
 0xcbc   : > { %s2405_s15 = scalar_lea.hbm %s2936_s19, 16  ;;  %s2409_s18 = scalar_lea.hbm %s3080_s28, 32 }
 0xcbd   : > { %p2406_p11 = scmp.ne.s32.totalorder %s2936_s19, %s2405_s15  ;;  %p2410_p0 = scmp.lt.u32.totalorder %s2936_s19, %s3080_s28 }
 0xcbe   : > { %p2411_p1 = scmp.lt.u32.totalorder %s2409_s18, %s2405_s15  ;;  %p2413_p4 = scmp.lt.u32.totalorder %s2405_s15, %s2936_s19 }
 0xcbf   : > { %p2407_p12 = pnand %p2406_p11, %p2660_p3 }
 0xcc0   : > { %p2412_p2 = por %p2411_p1, %p2410_p0 }
 0xcc1   : > { %p2408_p13 = pneg %p2407_p12 }
 0xcc2   : > { %p2414_p5 = por %p2413_p4, %p2412_p2 }
 0xcc4   : > { %p2415_p6 = pnand %p2414_p5, %p2408_p13 }
 0xcc6   : > { %2418 = shalt.err (!%p2415_p6)
}
 0xcc7   : > { %2260 = dma.vmem_to_hbm [thread:$0]  (%p2660_p3), %s1868_s20, 16, %s2936_s19, %s1855_s3  }
 0xcc8 PF: > { %s3082_s21 = sld [smem:[#allocation12_spill]]  ;;  %s3083_s17 = sld [smem:[#allocation6_spill]] }
 0xcce   : > { %p2266_p7 = scmp.ge.s32.totalorder %s3082_s21, 2  ;;  %s1879_s1 = sand.u32 1, %s3083_s17  }
 0xccf   : > { %s1880_s4 = scalar_lea.sflag [#allocation4], %s1879_s1 }
 0xcd0   : > { %p2263_p8 = pnand %p2266_p7, %p2670_p9 }
 0xcd2   : > { %2452 = dma.done.wait (!%p2263_p8), %s1880_s4, 16  }
 0xcd3   : > { %2454 = vsyncadd (!%p2263_p8), %s1880_s4, 4294967280  ;;  %s33_s26 = sadd.s32 1, %s3082_s21   ;;  %s3085_s2 = sld [smem:[#allocation7_spill]] }
 0xcd4   : > { %p30_p10 = scmp.ge.s32.totalorder %s33_s26, 6   ;;  %s3086_s23 = sld [smem:[#allocation17_spill]] }
 0xcd5   : > { %s3087_s24 = sld [smem:[#allocation10_spill]]  ;;  %s3088_s27 = sld [smem:[#allocation11_spill]] }
 0xcd6   : > { %s3089_s25 = sld [smem:[#allocation13_spill]]  ;;  %s3090_s3 = sld [smem:[#allocation15_spill]] }
 0xcd7   : > { %s3091_s1 = smov %s2461_s22  ;;  %32 = sbr.rel (!%p30_p10) target bundleno = 21 (0x15), region = 182 }
 0xcd9   : > { %s3092_s22 = smov %s3085_s2 }
 0xcdb   : > { %s3093_s2 = smov %s3088_s27 }
 0xcde   :  { %1884 = vsyncpa [#allocation4], 1 }
 0xcdf   :  { %1886 = vsyncpa [#allocation4 + $0x1], 1 }

</bundles_post_ra>
